<compile_context>
chip_gen: v7x
topology: tpu7x:2x2x1
jax: 0.10.0
libtpu: 0.0.40
codegen_flags: <defaults>
</compile_context>

<pallas_src>
import functools

import jax
import jax.numpy as jnp
from jax import lax
from jax.experimental import pallas as pl
from jax.experimental.pallas import tpu as pltpu

FEATURE_DIM = 4        # in/out channels of the ResBlock
N_RES_FILTERS = 8      # args.n_res_filters
RES_KERNEL = 3         # args.res_kernel_size
RES_STRIDE = 1         # args.res_stride
RES_PAD = 1            # args.res_padding
BN_EPS = 1e-5


def _coords(hw, h, w):
    """Per-lane (x, y) pixel coordinates of a flattened (h*w,) lane axis."""
    lane = lax.broadcasted_iota(jnp.int32, (1, hw), 1)
    if (w & (w - 1)) == 0:                       # power of two: bit ops (VPU-cheap)
        px = lane & (w - 1)
        py = lane >> (w.bit_length() - 1)
    else:
        px = lane % w
        py = lane // w
    return px, py


def resblock_kernel(x_ref, w1_ref, p1_ref, w2_ref, p2_ref, o_ref, *, n, h, w):
    """ResBlock forward in the native (N*ch, H*W) layout.

    x_ref : (N*C, H*W)        input, row = img*C + channel (pure reshape of NCHW)
    w1_ref: (N*F, K*K*N*C)    conv1 im2col weight, block-diagonal over the batch
    p1_ref: (N*F, 3)          [conv1 bias, BN1 gamma, BN1 beta], replicated per image
    w2_ref: (N*C, K*K*N*F)    conv2 im2col weight, block-diagonal over the batch
    p2_ref: (N*C, 3)          [conv2 bias, BN2 gamma, BN2 beta], replicated per image
    o_ref : (N*C, H*W)        output, same row order as the input (lane-dense)
    """
    k, pad = RES_KERNEL, RES_PAD
    nc, hw = x_ref.shape
    nf = w1_ref.shape[0]
    c, f = nc // n, nf // n
    inv_m = 1.0 / (n * hw)                 # BN pools over N*H*W elements per channel

    x = x_ref[...]                         # (N*C, HW); stays in vregs throughout

    # Per-tap lane shift + border-validity mask, shared by both convs.
    px, py = _coords(hw, h, w)
    taps = []
    for dy in range(k):
        for dx in range(k):
            ry, rx = dy - pad, dx - pad
            valid = (((px + rx) >= 0) & ((px + rx) < w) &
                     ((py + ry) >= 0) & ((py + ry) < h))
            taps.append((ry * w + rx, valid))

    def im2col(a):
        # a: (rows, HW) activation held in vregs.  Want out[l] = a[l + d] for
        # every mask-valid lane; realized as a wrap-around lane roll (XLU) +
        # select.  Wrapped lanes are always mask-invalid (each row is one
        # image's flattened plane), so the wrap never leaks.  The select must
        # stay a true select (jnp.where), not a mask-multiply.
        pieces = []
        for d, valid in taps:
            shifted = a if d == 0 else pltpu.roll(a, (-d) % hw, axis=1)
            pieces.append(jnp.where(valid, shifted, 0.0))
        return jnp.concatenate(pieces, axis=0)        # (K*K*rows, HW), tile-aligned

    def batchnorm(a, p_ref, ch):
        # a: (n*ch, HW) conv output (row = img*ch + channel).
        # Batch stats pool across images with a tiny 0/1 (rows,rows) matmul so
        # no sublane reshape is needed; one-pass variance clamped >= 0.
        rows = a.shape[0]
        a = a + p_ref[:, 0:1]                          # conv bias
        ri = lax.broadcasted_iota(jnp.int32, (rows, rows), 0)
        rj = lax.broadcasted_iota(jnp.int32, (rows, rows), 1)
        if (ch & (ch - 1)) == 0:
            same_ch = (ri & (ch - 1)) == (rj & (ch - 1))
        else:
            same_ch = (ri % ch) == (rj % ch)
        pool = same_ch.astype(jnp.float32)             # (rows, rows)
        s1 = jnp.sum(a, axis=1, keepdims=True)         # (rows, 1)
        s2 = jnp.sum(a * a, axis=1, keepdims=True)
        mean = jnp.dot(pool, s1, preferred_element_type=jnp.float32) * inv_m
        ex2 = jnp.dot(pool, s2, preferred_element_type=jnp.float32) * inv_m
        var = jnp.maximum(ex2 - mean * mean, 0.0)
        scale = p_ref[:, 1:2] * lax.rsqrt(var + BN_EPS)
        return a * scale + (p_ref[:, 2:3] - mean * scale)

    # conv1 (single fused im2col MXU contraction for the whole batch) -> BN1 -> ReLU
    a1 = jnp.dot(w1_ref[...], im2col(x),
                 preferred_element_type=jnp.float32)   # (N*F, HW)
    h1 = jnp.maximum(batchnorm(a1, p1_ref, f), 0.0)

    # conv2 -> BN2 ; h1 never leaves vregs (no padded VMEM staging / re-reads)
    a2 = jnp.dot(w2_ref[...], im2col(h1),
                 preferred_element_type=jnp.float32)   # (N*C, HW)
    h2 = batchnorm(a2, p2_ref, c)

    # residual add + final ReLU; lane-dense unmasked store in native row order
    o_ref[...] = jnp.maximum(x + h2, 0.0).astype(o_ref.dtype)


@jax.jit
def resblock_forward(x_nchw, params):
    """PyTorch-compatible wrapper: NCHW in, NCHW out (reshapes only, no transposes)."""
    w1, b1, g1, be1, w2, b2, g2, be2 = params          # conv weights in OIHW
    n, c, h, w = x_nchw.shape
    f = w1.shape[0]
    k = RES_KERNEL
    hw = h * w

    # Native layout: rows = img-major/channel-minor, lanes = one image's pixels.
    x2d = x_nchw.reshape(n * c, hw)                    # free view, no relayout kernel

    # Batch-block-diagonal im2col weights so one matmul per conv covers all
    # images:  W1[i*F+f, t*(N*C)+j*C+ci] = w1[f, ci, t] * (i == j).
    eye_n = jnp.eye(n, dtype=x_nchw.dtype)
    w1_r = w1.reshape(f, c, k * k).transpose(0, 2, 1)  # (F, T, C)
    w1_big = jnp.einsum('ij,ftc->iftjc', eye_n, w1_r).reshape(n * f, k * k * n * c)
    w2_r = w2.reshape(c, f, k * k).transpose(0, 2, 1)  # (C, T, F)
    w2_big = jnp.einsum('ij,ctf->ictjf', eye_n, w2_r).reshape(n * c, k * k * n * f)

    # Packed per-row params [conv bias, BN gamma, BN beta], replicated per image.
    p1 = jnp.tile(jnp.stack([b1, g1, be1], axis=1), (n, 1))   # (N*F, 3)
    p2 = jnp.tile(jnp.stack([b2, g2, be2], axis=1), (n, 1))   # (N*C, 3)

    vmem = functools.partial(pl.BlockSpec, memory_space=pltpu.MemorySpace.VMEM)
    # Single invocation (no grid): the whole problem is a few KiB and fits VMEM
    # many times over on v5e/v6e/v7x.  For much larger H*W, tile the lane axis
    # with a grid + dimension_semantics=("parallel",) (engages v7x's 2nd core),
    # keeping the per-step footprint under the default scoped VMEM limit.
    out2d = pl.pallas_call(
        functools.partial(resblock_kernel, n=n, h=h, w=w),
        out_shape=jax.ShapeDtypeStruct((n * c, hw), x_nchw.dtype),
        in_specs=[vmem() for _ in range(5)],
        out_specs=vmem(),
    )(x2d, w1_big, p1, w2_big, p2)

    return out2d.reshape(n, c, h, w)
    # TODO(synk): BatchNorm running-mean/var buffer updates (a training-mode
    # side effect, not part of the returned activation) are not emitted.


# ---------------- pure-JAX reference (correctness check only) ----------------
def _conv_ref(x, w_oihw, b):
    y = lax.conv_general_dilated(
        x, w_oihw, window_strides=(RES_STRIDE, RES_STRIDE),
        padding=[(RES_PAD, RES_PAD), (RES_PAD, RES_PAD)],
        dimension_numbers=('NCHW', 'OIHW', 'NCHW'))
    return y + b.reshape(1, -1, 1, 1)


def _bn_ref(x, g, be):
    mean = jnp.mean(x, axis=(0, 2, 3), keepdims=True)
    var = jnp.mean((x - mean) ** 2, axis=(0, 2, 3), keepdims=True)
    return (x - mean) * lax.rsqrt(var + BN_EPS) * g.reshape(1, -1, 1, 1) \
        + be.reshape(1, -1, 1, 1)


def resblock_reference(x, params):
    w1, b1, g1, be1, w2, b2, g2, be2 = params
    hmid = jnp.maximum(_bn_ref(_conv_ref(x, w1, b1), g1, be1), 0.0)
    hout = _bn_ref(_conv_ref(hmid, w2, b2), g2, be2)
    return jnp.maximum(x + hout, 0.0)


def init_params(key):
    ks = jax.random.split(key, 8)
    c, f, k = FEATURE_DIM, N_RES_FILTERS, RES_KERNEL
    w1 = jax.random.normal(ks[0], (f, c, k, k), jnp.float32) * 0.1      # OIHW
    b1 = 0.1 * jax.random.normal(ks[1], (f,), jnp.float32)
    g1 = 1.0 + 0.1 * jax.random.normal(ks[2], (f,), jnp.float32)
    be1 = 0.1 * jax.random.normal(ks[3], (f,), jnp.float32)
    w2 = jax.random.normal(ks[4], (c, f, k, k), jnp.float32) * 0.1      # OIHW
    b2 = 0.1 * jax.random.normal(ks[5], (c,), jnp.float32)
    g2 = 1.0 + 0.1 * jax.random.normal(ks[6], (c,), jnp.float32)
    be2 = 0.1 * jax.random.normal(ks[7], (c,), jnp.float32)
    return (w1, b1, g1, be1, w2, b2, g2, be2)


if __name__ == "__main__":
    key = jax.random.PRNGKey(0)
    kx, kp = jax.random.split(key)
    x = jax.random.normal(kx, (2, FEATURE_DIM, 16, 16), jnp.float32)    # NCHW
    params = init_params(kp)

    out = jax.block_until_ready(resblock_forward(x, params))
    ref = resblock_reference(x, params)
    if not bool(jnp.allclose(out, ref, atol=2e-3, rtol=2e-3)):
        raise AssertionError(
            "mismatch vs reference, max|diff|="
            f"{float(jnp.max(jnp.abs(out - ref)))}")
    print("KERNEL_OK")
</pallas_src>

<mosaic_0001>
module attributes {stable_mosaic.version = 11 : i64} {
  func.func @resblock_kernel(%arg0: memref<8x256xf32, #tpu.memory_space<vmem>>, %arg1: memref<16x72xf32, #tpu.memory_space<vmem>>, %arg2: memref<16x3xf32, #tpu.memory_space<vmem>>, %arg3: memref<8x144xf32, #tpu.memory_space<vmem>>, %arg4: memref<8x3xf32, #tpu.memory_space<vmem>>, %arg5: memref<8x256xf32, #tpu.memory_space<vmem>>) attributes {dimension_semantics = [], scalar_prefetch = 0 : i64, scratch_operands = 0 : i64, tpu.core_type = #tpu.core_type<tc>} {
    %c0 = arith.constant 0 : index
    %c0_0 = arith.constant 0 : index
    %0 = vector.load %arg0[%c0, %c0_0] : memref<8x256xf32, #tpu.memory_space<vmem>>, vector<8x256xf32>
    %1 = tpu.iota {dimensions = array<i32: 1>} : vector<1x256xi32>
    %c15_i32 = arith.constant 15 : i32
    %2 = vector.broadcast %c15_i32 : i32 to vector<1x256xi32>
    %3 = arith.andi %1, %2 : vector<1x256xi32>
    %c4_i32 = arith.constant 4 : i32
    %4 = vector.broadcast %c4_i32 : i32 to vector<1x256xi32>
    %5 = arith.shrsi %1, %4 : vector<1x256xi32>
    %c-1_i32 = arith.constant -1 : i32
    %6 = vector.broadcast %c-1_i32 : i32 to vector<1x256xi32>
    %7 = arith.addi %3, %6 : vector<1x256xi32>
    %c0_i32 = arith.constant 0 : i32
    %8 = vector.broadcast %c0_i32 : i32 to vector<1x256xi32>
    %9 = arith.cmpi sge, %7, %8 : vector<1x256xi32>
    %c-1_i32_1 = arith.constant -1 : i32
    %10 = vector.broadcast %c-1_i32_1 : i32 to vector<1x256xi32>
    %11 = arith.addi %3, %10 : vector<1x256xi32>
    %c16_i32 = arith.constant 16 : i32
    %12 = vector.broadcast %c16_i32 : i32 to vector<1x256xi32>
    %13 = arith.cmpi slt, %11, %12 : vector<1x256xi32>
    %14 = arith.andi %9, %13 : vector<1x256xi1>
    %c-1_i32_2 = arith.constant -1 : i32
    %15 = vector.broadcast %c-1_i32_2 : i32 to vector<1x256xi32>
    %16 = arith.addi %5, %15 : vector<1x256xi32>
    %c0_i32_3 = arith.constant 0 : i32
    %17 = vector.broadcast %c0_i32_3 : i32 to vector<1x256xi32>
    %18 = arith.cmpi sge, %16, %17 : vector<1x256xi32>
    %19 = arith.andi %14, %18 : vector<1x256xi1>
    %c-1_i32_4 = arith.constant -1 : i32
    %20 = vector.broadcast %c-1_i32_4 : i32 to vector<1x256xi32>
    %21 = arith.addi %5, %20 : vector<1x256xi32>
    %c16_i32_5 = arith.constant 16 : i32
    %22 = vector.broadcast %c16_i32_5 : i32 to vector<1x256xi32>
    %23 = arith.cmpi slt, %21, %22 : vector<1x256xi32>
    %24 = arith.andi %19, %23 : vector<1x256xi1>
    %c0_i32_6 = arith.constant 0 : i32
    %25 = vector.broadcast %c0_i32_6 : i32 to vector<1x256xi32>
    %26 = arith.addi %3, %25 : vector<1x256xi32>
    %c0_i32_7 = arith.constant 0 : i32
    %27 = vector.broadcast %c0_i32_7 : i32 to vector<1x256xi32>
    %28 = arith.cmpi sge, %26, %27 : vector<1x256xi32>
    %c0_i32_8 = arith.constant 0 : i32
    %29 = vector.broadcast %c0_i32_8 : i32 to vector<1x256xi32>
    %30 = arith.addi %3, %29 : vector<1x256xi32>
    %c16_i32_9 = arith.constant 16 : i32
    %31 = vector.broadcast %c16_i32_9 : i32 to vector<1x256xi32>
    %32 = arith.cmpi slt, %30, %31 : vector<1x256xi32>
    %33 = arith.andi %28, %32 : vector<1x256xi1>
    %c-1_i32_10 = arith.constant -1 : i32
    %34 = vector.broadcast %c-1_i32_10 : i32 to vector<1x256xi32>
    %35 = arith.addi %5, %34 : vector<1x256xi32>
    %c0_i32_11 = arith.constant 0 : i32
    %36 = vector.broadcast %c0_i32_11 : i32 to vector<1x256xi32>
    %37 = arith.cmpi sge, %35, %36 : vector<1x256xi32>
    %38 = arith.andi %33, %37 : vector<1x256xi1>
    %c-1_i32_12 = arith.constant -1 : i32
    %39 = vector.broadcast %c-1_i32_12 : i32 to vector<1x256xi32>
    %40 = arith.addi %5, %39 : vector<1x256xi32>
    %c16_i32_13 = arith.constant 16 : i32
    %41 = vector.broadcast %c16_i32_13 : i32 to vector<1x256xi32>
    %42 = arith.cmpi slt, %40, %41 : vector<1x256xi32>
    %43 = arith.andi %38, %42 : vector<1x256xi1>
    %c1_i32 = arith.constant 1 : i32
    %44 = vector.broadcast %c1_i32 : i32 to vector<1x256xi32>
    %45 = arith.addi %3, %44 : vector<1x256xi32>
    %c0_i32_14 = arith.constant 0 : i32
    %46 = vector.broadcast %c0_i32_14 : i32 to vector<1x256xi32>
    %47 = arith.cmpi sge, %45, %46 : vector<1x256xi32>
    %c1_i32_15 = arith.constant 1 : i32
    %48 = vector.broadcast %c1_i32_15 : i32 to vector<1x256xi32>
    %49 = arith.addi %3, %48 : vector<1x256xi32>
    %c16_i32_16 = arith.constant 16 : i32
    %50 = vector.broadcast %c16_i32_16 : i32 to vector<1x256xi32>
    %51 = arith.cmpi slt, %49, %50 : vector<1x256xi32>
    %52 = arith.andi %47, %51 : vector<1x256xi1>
    %c-1_i32_17 = arith.constant -1 : i32
    %53 = vector.broadcast %c-1_i32_17 : i32 to vector<1x256xi32>
    %54 = arith.addi %5, %53 : vector<1x256xi32>
    %c0_i32_18 = arith.constant 0 : i32
    %55 = vector.broadcast %c0_i32_18 : i32 to vector<1x256xi32>
    %56 = arith.cmpi sge, %54, %55 : vector<1x256xi32>
    %57 = arith.andi %52, %56 : vector<1x256xi1>
    %c-1_i32_19 = arith.constant -1 : i32
    %58 = vector.broadcast %c-1_i32_19 : i32 to vector<1x256xi32>
    %59 = arith.addi %5, %58 : vector<1x256xi32>
    %c16_i32_20 = arith.constant 16 : i32
    %60 = vector.broadcast %c16_i32_20 : i32 to vector<1x256xi32>
    %61 = arith.cmpi slt, %59, %60 : vector<1x256xi32>
    %62 = arith.andi %57, %61 : vector<1x256xi1>
    %c-1_i32_21 = arith.constant -1 : i32
    %63 = vector.broadcast %c-1_i32_21 : i32 to vector<1x256xi32>
    %64 = arith.addi %3, %63 : vector<1x256xi32>
    %c0_i32_22 = arith.constant 0 : i32
    %65 = vector.broadcast %c0_i32_22 : i32 to vector<1x256xi32>
    %66 = arith.cmpi sge, %64, %65 : vector<1x256xi32>
    %c-1_i32_23 = arith.constant -1 : i32
    %67 = vector.broadcast %c-1_i32_23 : i32 to vector<1x256xi32>
    %68 = arith.addi %3, %67 : vector<1x256xi32>
    %c16_i32_24 = arith.constant 16 : i32
    %69 = vector.broadcast %c16_i32_24 : i32 to vector<1x256xi32>
    %70 = arith.cmpi slt, %68, %69 : vector<1x256xi32>
    %71 = arith.andi %66, %70 : vector<1x256xi1>
    %c0_i32_25 = arith.constant 0 : i32
    %72 = vector.broadcast %c0_i32_25 : i32 to vector<1x256xi32>
    %73 = arith.addi %5, %72 : vector<1x256xi32>
    %c0_i32_26 = arith.constant 0 : i32
    %74 = vector.broadcast %c0_i32_26 : i32 to vector<1x256xi32>
    %75 = arith.cmpi sge, %73, %74 : vector<1x256xi32>
    %76 = arith.andi %71, %75 : vector<1x256xi1>
    %c0_i32_27 = arith.constant 0 : i32
    %77 = vector.broadcast %c0_i32_27 : i32 to vector<1x256xi32>
    %78 = arith.addi %5, %77 : vector<1x256xi32>
    %c16_i32_28 = arith.constant 16 : i32
    %79 = vector.broadcast %c16_i32_28 : i32 to vector<1x256xi32>
    %80 = arith.cmpi slt, %78, %79 : vector<1x256xi32>
    %81 = arith.andi %76, %80 : vector<1x256xi1>
    %c0_i32_29 = arith.constant 0 : i32
    %82 = vector.broadcast %c0_i32_29 : i32 to vector<1x256xi32>
    %83 = arith.addi %3, %82 : vector<1x256xi32>
    %c0_i32_30 = arith.constant 0 : i32
    %84 = vector.broadcast %c0_i32_30 : i32 to vector<1x256xi32>
    %85 = arith.cmpi sge, %83, %84 : vector<1x256xi32>
    %c0_i32_31 = arith.constant 0 : i32
    %86 = vector.broadcast %c0_i32_31 : i32 to vector<1x256xi32>
    %87 = arith.addi %3, %86 : vector<1x256xi32>
    %c16_i32_32 = arith.constant 16 : i32
    %88 = vector.broadcast %c16_i32_32 : i32 to vector<1x256xi32>
    %89 = arith.cmpi slt, %87, %88 : vector<1x256xi32>
    %90 = arith.andi %85, %89 : vector<1x256xi1>
    %c0_i32_33 = arith.constant 0 : i32
    %91 = vector.broadcast %c0_i32_33 : i32 to vector<1x256xi32>
    %92 = arith.addi %5, %91 : vector<1x256xi32>
    %c0_i32_34 = arith.constant 0 : i32
    %93 = vector.broadcast %c0_i32_34 : i32 to vector<1x256xi32>
    %94 = arith.cmpi sge, %92, %93 : vector<1x256xi32>
    %95 = arith.andi %90, %94 : vector<1x256xi1>
    %c0_i32_35 = arith.constant 0 : i32
    %96 = vector.broadcast %c0_i32_35 : i32 to vector<1x256xi32>
    %97 = arith.addi %5, %96 : vector<1x256xi32>
    %c16_i32_36 = arith.constant 16 : i32
    %98 = vector.broadcast %c16_i32_36 : i32 to vector<1x256xi32>
    %99 = arith.cmpi slt, %97, %98 : vector<1x256xi32>
    %100 = arith.andi %95, %99 : vector<1x256xi1>
    %c1_i32_37 = arith.constant 1 : i32
    %101 = vector.broadcast %c1_i32_37 : i32 to vector<1x256xi32>
    %102 = arith.addi %3, %101 : vector<1x256xi32>
    %c0_i32_38 = arith.constant 0 : i32
    %103 = vector.broadcast %c0_i32_38 : i32 to vector<1x256xi32>
    %104 = arith.cmpi sge, %102, %103 : vector<1x256xi32>
    %c1_i32_39 = arith.constant 1 : i32
    %105 = vector.broadcast %c1_i32_39 : i32 to vector<1x256xi32>
    %106 = arith.addi %3, %105 : vector<1x256xi32>
    %c16_i32_40 = arith.constant 16 : i32
    %107 = vector.broadcast %c16_i32_40 : i32 to vector<1x256xi32>
    %108 = arith.cmpi slt, %106, %107 : vector<1x256xi32>
    %109 = arith.andi %104, %108 : vector<1x256xi1>
    %c0_i32_41 = arith.constant 0 : i32
    %110 = vector.broadcast %c0_i32_41 : i32 to vector<1x256xi32>
    %111 = arith.addi %5, %110 : vector<1x256xi32>
    %c0_i32_42 = arith.constant 0 : i32
    %112 = vector.broadcast %c0_i32_42 : i32 to vector<1x256xi32>
    %113 = arith.cmpi sge, %111, %112 : vector<1x256xi32>
    %114 = arith.andi %109, %113 : vector<1x256xi1>
    %c0_i32_43 = arith.constant 0 : i32
    %115 = vector.broadcast %c0_i32_43 : i32 to vector<1x256xi32>
    %116 = arith.addi %5, %115 : vector<1x256xi32>
    %c16_i32_44 = arith.constant 16 : i32
    %117 = vector.broadcast %c16_i32_44 : i32 to vector<1x256xi32>
    %118 = arith.cmpi slt, %116, %117 : vector<1x256xi32>
    %119 = arith.andi %114, %118 : vector<1x256xi1>
    %c-1_i32_45 = arith.constant -1 : i32
    %120 = vector.broadcast %c-1_i32_45 : i32 to vector<1x256xi32>
    %121 = arith.addi %3, %120 : vector<1x256xi32>
    %c0_i32_46 = arith.constant 0 : i32
    %122 = vector.broadcast %c0_i32_46 : i32 to vector<1x256xi32>
    %123 = arith.cmpi sge, %121, %122 : vector<1x256xi32>
    %c-1_i32_47 = arith.constant -1 : i32
    %124 = vector.broadcast %c-1_i32_47 : i32 to vector<1x256xi32>
    %125 = arith.addi %3, %124 : vector<1x256xi32>
    %c16_i32_48 = arith.constant 16 : i32
    %126 = vector.broadcast %c16_i32_48 : i32 to vector<1x256xi32>
    %127 = arith.cmpi slt, %125, %126 : vector<1x256xi32>
    %128 = arith.andi %123, %127 : vector<1x256xi1>
    %c1_i32_49 = arith.constant 1 : i32
    %129 = vector.broadcast %c1_i32_49 : i32 to vector<1x256xi32>
    %130 = arith.addi %5, %129 : vector<1x256xi32>
    %c0_i32_50 = arith.constant 0 : i32
    %131 = vector.broadcast %c0_i32_50 : i32 to vector<1x256xi32>
    %132 = arith.cmpi sge, %130, %131 : vector<1x256xi32>
    %133 = arith.andi %128, %132 : vector<1x256xi1>
    %c1_i32_51 = arith.constant 1 : i32
    %134 = vector.broadcast %c1_i32_51 : i32 to vector<1x256xi32>
    %135 = arith.addi %5, %134 : vector<1x256xi32>
    %c16_i32_52 = arith.constant 16 : i32
    %136 = vector.broadcast %c16_i32_52 : i32 to vector<1x256xi32>
    %137 = arith.cmpi slt, %135, %136 : vector<1x256xi32>
    %138 = arith.andi %133, %137 : vector<1x256xi1>
    %c0_i32_53 = arith.constant 0 : i32
    %139 = vector.broadcast %c0_i32_53 : i32 to vector<1x256xi32>
    %140 = arith.addi %3, %139 : vector<1x256xi32>
    %c0_i32_54 = arith.constant 0 : i32
    %141 = vector.broadcast %c0_i32_54 : i32 to vector<1x256xi32>
    %142 = arith.cmpi sge, %140, %141 : vector<1x256xi32>
    %c0_i32_55 = arith.constant 0 : i32
    %143 = vector.broadcast %c0_i32_55 : i32 to vector<1x256xi32>
    %144 = arith.addi %3, %143 : vector<1x256xi32>
    %c16_i32_56 = arith.constant 16 : i32
    %145 = vector.broadcast %c16_i32_56 : i32 to vector<1x256xi32>
    %146 = arith.cmpi slt, %144, %145 : vector<1x256xi32>
    %147 = arith.andi %142, %146 : vector<1x256xi1>
    %c1_i32_57 = arith.constant 1 : i32
    %148 = vector.broadcast %c1_i32_57 : i32 to vector<1x256xi32>
    %149 = arith.addi %5, %148 : vector<1x256xi32>
    %c0_i32_58 = arith.constant 0 : i32
    %150 = vector.broadcast %c0_i32_58 : i32 to vector<1x256xi32>
    %151 = arith.cmpi sge, %149, %150 : vector<1x256xi32>
    %152 = arith.andi %147, %151 : vector<1x256xi1>
    %c1_i32_59 = arith.constant 1 : i32
    %153 = vector.broadcast %c1_i32_59 : i32 to vector<1x256xi32>
    %154 = arith.addi %5, %153 : vector<1x256xi32>
    %c16_i32_60 = arith.constant 16 : i32
    %155 = vector.broadcast %c16_i32_60 : i32 to vector<1x256xi32>
    %156 = arith.cmpi slt, %154, %155 : vector<1x256xi32>
    %157 = arith.andi %152, %156 : vector<1x256xi1>
    %c1_i32_61 = arith.constant 1 : i32
    %158 = vector.broadcast %c1_i32_61 : i32 to vector<1x256xi32>
    %159 = arith.addi %3, %158 : vector<1x256xi32>
    %c0_i32_62 = arith.constant 0 : i32
    %160 = vector.broadcast %c0_i32_62 : i32 to vector<1x256xi32>
    %161 = arith.cmpi sge, %159, %160 : vector<1x256xi32>
    %c1_i32_63 = arith.constant 1 : i32
    %162 = vector.broadcast %c1_i32_63 : i32 to vector<1x256xi32>
    %163 = arith.addi %3, %162 : vector<1x256xi32>
    %c16_i32_64 = arith.constant 16 : i32
    %164 = vector.broadcast %c16_i32_64 : i32 to vector<1x256xi32>
    %165 = arith.cmpi slt, %163, %164 : vector<1x256xi32>
    %166 = arith.andi %161, %165 : vector<1x256xi1>
    %c1_i32_65 = arith.constant 1 : i32
    %167 = vector.broadcast %c1_i32_65 : i32 to vector<1x256xi32>
    %168 = arith.addi %5, %167 : vector<1x256xi32>
    %c0_i32_66 = arith.constant 0 : i32
    %169 = vector.broadcast %c0_i32_66 : i32 to vector<1x256xi32>
    %170 = arith.cmpi sge, %168, %169 : vector<1x256xi32>
    %171 = arith.andi %166, %170 : vector<1x256xi1>
    %c1_i32_67 = arith.constant 1 : i32
    %172 = vector.broadcast %c1_i32_67 : i32 to vector<1x256xi32>
    %173 = arith.addi %5, %172 : vector<1x256xi32>
    %c16_i32_68 = arith.constant 16 : i32
    %174 = vector.broadcast %c16_i32_68 : i32 to vector<1x256xi32>
    %175 = arith.cmpi slt, %173, %174 : vector<1x256xi32>
    %176 = arith.andi %171, %175 : vector<1x256xi1>
    %c0_69 = arith.constant 0 : index
    %c0_70 = arith.constant 0 : index
    %177 = vector.load %arg1[%c0_69, %c0_70] : memref<16x72xf32, #tpu.memory_space<vmem>>, vector<16x72xf32>
    %c17_i32 = arith.constant 17 : i32
    %178 = tpu.dynamic_rotate %0 by %c17_i32 dim 1 : vector<8x256xf32>, i32 -> vector<8x256xf32>
    %cst = arith.constant 0.000000e+00 : f32
    %179 = vector.shape_cast %24 : vector<1x256xi1> to vector<1x256xi1>
    %180 = vector.broadcast %179 : vector<1x256xi1> to vector<8x256xi1>
    %181 = vector.broadcast %cst : f32 to vector<8x256xf32>
    %182 = arith.select %180, %178, %181 : vector<8x256xi1>, vector<8x256xf32>
    %c16_i32_71 = arith.constant 16 : i32
    %183 = tpu.dynamic_rotate %0 by %c16_i32_71 dim 1 : vector<8x256xf32>, i32 -> vector<8x256xf32>
    %cst_72 = arith.constant 0.000000e+00 : f32
    %184 = vector.shape_cast %43 : vector<1x256xi1> to vector<1x256xi1>
    %185 = vector.broadcast %184 : vector<1x256xi1> to vector<8x256xi1>
    %186 = vector.broadcast %cst_72 : f32 to vector<8x256xf32>
    %187 = arith.select %185, %183, %186 : vector<8x256xi1>, vector<8x256xf32>
    %c15_i32_73 = arith.constant 15 : i32
    %188 = tpu.dynamic_rotate %0 by %c15_i32_73 dim 1 : vector<8x256xf32>, i32 -> vector<8x256xf32>
    %cst_74 = arith.constant 0.000000e+00 : f32
    %189 = vector.shape_cast %62 : vector<1x256xi1> to vector<1x256xi1>
    %190 = vector.broadcast %189 : vector<1x256xi1> to vector<8x256xi1>
    %191 = vector.broadcast %cst_74 : f32 to vector<8x256xf32>
    %192 = arith.select %190, %188, %191 : vector<8x256xi1>, vector<8x256xf32>
    %c1_i32_75 = arith.constant 1 : i32
    %193 = tpu.dynamic_rotate %0 by %c1_i32_75 dim 1 : vector<8x256xf32>, i32 -> vector<8x256xf32>
    %cst_76 = arith.constant 0.000000e+00 : f32
    %194 = vector.shape_cast %81 : vector<1x256xi1> to vector<1x256xi1>
    %195 = vector.broadcast %194 : vector<1x256xi1> to vector<8x256xi1>
    %196 = vector.broadcast %cst_76 : f32 to vector<8x256xf32>
    %197 = arith.select %195, %193, %196 : vector<8x256xi1>, vector<8x256xf32>
    %cst_77 = arith.constant 0.000000e+00 : f32
    %198 = vector.shape_cast %100 : vector<1x256xi1> to vector<1x256xi1>
    %199 = vector.broadcast %198 : vector<1x256xi1> to vector<8x256xi1>
    %200 = vector.broadcast %cst_77 : f32 to vector<8x256xf32>
    %201 = arith.select %199, %0, %200 : vector<8x256xi1>, vector<8x256xf32>
    %c255_i32 = arith.constant 255 : i32
    %202 = tpu.dynamic_rotate %0 by %c255_i32 dim 1 : vector<8x256xf32>, i32 -> vector<8x256xf32>
    %cst_78 = arith.constant 0.000000e+00 : f32
    %203 = vector.shape_cast %119 : vector<1x256xi1> to vector<1x256xi1>
    %204 = vector.broadcast %203 : vector<1x256xi1> to vector<8x256xi1>
    %205 = vector.broadcast %cst_78 : f32 to vector<8x256xf32>
    %206 = arith.select %204, %202, %205 : vector<8x256xi1>, vector<8x256xf32>
    %c241_i32 = arith.constant 241 : i32
    %207 = tpu.dynamic_rotate %0 by %c241_i32 dim 1 : vector<8x256xf32>, i32 -> vector<8x256xf32>
    %cst_79 = arith.constant 0.000000e+00 : f32
    %208 = vector.shape_cast %138 : vector<1x256xi1> to vector<1x256xi1>
    %209 = vector.broadcast %208 : vector<1x256xi1> to vector<8x256xi1>
    %210 = vector.broadcast %cst_79 : f32 to vector<8x256xf32>
    %211 = arith.select %209, %207, %210 : vector<8x256xi1>, vector<8x256xf32>
    %c240_i32 = arith.constant 240 : i32
    %212 = tpu.dynamic_rotate %0 by %c240_i32 dim 1 : vector<8x256xf32>, i32 -> vector<8x256xf32>
    %cst_80 = arith.constant 0.000000e+00 : f32
    %213 = vector.shape_cast %157 : vector<1x256xi1> to vector<1x256xi1>
    %214 = vector.broadcast %213 : vector<1x256xi1> to vector<8x256xi1>
    %215 = vector.broadcast %cst_80 : f32 to vector<8x256xf32>
    %216 = arith.select %214, %212, %215 : vector<8x256xi1>, vector<8x256xf32>
    %c239_i32 = arith.constant 239 : i32
    %217 = tpu.dynamic_rotate %0 by %c239_i32 dim 1 : vector<8x256xf32>, i32 -> vector<8x256xf32>
    %cst_81 = arith.constant 0.000000e+00 : f32
    %218 = vector.shape_cast %176 : vector<1x256xi1> to vector<1x256xi1>
    %219 = vector.broadcast %218 : vector<1x256xi1> to vector<8x256xi1>
    %220 = vector.broadcast %cst_81 : f32 to vector<8x256xf32>
    %221 = arith.select %219, %217, %220 : vector<8x256xi1>, vector<8x256xf32>
    %222 = tpu.concatenate %182, %187, %192, %197, %201, %206, %211, %216, %221 in 0 : vector<8x256xf32>, vector<8x256xf32>, vector<8x256xf32>, vector<8x256xf32>, vector<8x256xf32>, vector<8x256xf32>, vector<8x256xf32>, vector<8x256xf32>, vector<8x256xf32> -> vector<72x256xf32>
    %cst_82 = arith.constant dense<0.000000e+00> : vector<16x256xf32>
    %223 = tpu.matmul %177, %222, %cst_82 {dimension_numbers = #tpu.dot_dimension_numbers<[1], [0], [0], [1], [0, 0, 1, 1], [], []>} : vector<16x72xf32>, vector<72x256xf32>, vector<16x256xf32> -> vector<16x256xf32>
    %c0_83 = arith.constant 0 : index
    %c0_84 = arith.constant 0 : index
    %224 = vector.load %arg2[%c0_83, %c0_84] : memref<16x3xf32, #tpu.memory_space<vmem>>, vector<16x1xf32>
    %225 = vector.broadcast %224 : vector<16x1xf32> to vector<16x256xf32>
    %226 = arith.addf %223, %225 : vector<16x256xf32>
    %227 = tpu.iota {dimensions = array<i32: 0>} : vector<16x16xi32>
    %228 = tpu.iota {dimensions = array<i32: 1>} : vector<16x16xi32>
    %c7_i32 = arith.constant 7 : i32
    %229 = vector.broadcast %c7_i32 : i32 to vector<16x16xi32>
    %230 = arith.andi %227, %229 : vector<16x16xi32>
    %c7_i32_85 = arith.constant 7 : i32
    %231 = vector.broadcast %c7_i32_85 : i32 to vector<16x16xi32>
    %232 = arith.andi %228, %231 : vector<16x16xi32>
    %233 = arith.cmpi eq, %230, %232 : vector<16x16xi32>
    %234 = arith.extui %233 : vector<16x16xi1> to vector<16x16xi32>
    %235 = arith.sitofp %234 : vector<16x16xi32> to vector<16x16xf32>
    %cst_86 = arith.constant dense<0.000000e+00> : vector<16xf32>
    %236 = vector.multi_reduction <add>, %226, %cst_86 [1] : vector<16x256xf32> to vector<16xf32>
    %237 = vector.shape_cast %236 : vector<16xf32> to vector<16x1xf32>
    %238 = arith.mulf %226, %226 : vector<16x256xf32>
    %cst_87 = arith.constant dense<0.000000e+00> : vector<16xf32>
    %239 = vector.multi_reduction <add>, %238, %cst_87 [1] : vector<16x256xf32> to vector<16xf32>
    %240 = vector.shape_cast %239 : vector<16xf32> to vector<16x1xf32>
    %cst_88 = arith.constant dense<0.000000e+00> : vector<16x1xf32>
    %241 = tpu.matmul %235, %237, %cst_88 {dimension_numbers = #tpu.dot_dimension_numbers<[1], [0], [0], [1], [0, 0, 1, 1], [], []>} : vector<16x16xf32>, vector<16x1xf32>, vector<16x1xf32> -> vector<16x1xf32>
    %cst_89 = arith.constant 0.001953125 : f32
    %242 = vector.broadcast %cst_89 : f32 to vector<16x1xf32>
    %243 = arith.mulf %241, %242 : vector<16x1xf32>
    %cst_90 = arith.constant dense<0.000000e+00> : vector<16x1xf32>
    %244 = tpu.matmul %235, %240, %cst_90 {dimension_numbers = #tpu.dot_dimension_numbers<[1], [0], [0], [1], [0, 0, 1, 1], [], []>} : vector<16x16xf32>, vector<16x1xf32>, vector<16x1xf32> -> vector<16x1xf32>
    %cst_91 = arith.constant 0.001953125 : f32
    %245 = vector.broadcast %cst_91 : f32 to vector<16x1xf32>
    %246 = arith.mulf %244, %245 : vector<16x1xf32>
    %247 = arith.mulf %243, %243 : vector<16x1xf32>
    %248 = arith.subf %246, %247 : vector<16x1xf32>
    %cst_92 = arith.constant 0.000000e+00 : f32
    %249 = vector.broadcast %cst_92 : f32 to vector<16x1xf32>
    %250 = arith.maximumf %248, %249 : vector<16x1xf32>
    %c0_93 = arith.constant 0 : index
    %c1 = arith.constant 1 : index
    %251 = vector.load %arg2[%c0_93, %c1] : memref<16x3xf32, #tpu.memory_space<vmem>>, vector<16x1xf32>
    %cst_94 = arith.constant 9.99999974E-6 : f32
    %252 = vector.broadcast %cst_94 : f32 to vector<16x1xf32>
    %253 = arith.addf %250, %252 : vector<16x1xf32>
    %254 = math.rsqrt %253 : vector<16x1xf32>
    %255 = arith.mulf %251, %254 : vector<16x1xf32>
    %256 = vector.broadcast %255 : vector<16x1xf32> to vector<16x256xf32>
    %257 = arith.mulf %226, %256 : vector<16x256xf32>
    %c0_95 = arith.constant 0 : index
    %c2 = arith.constant 2 : index
    %258 = vector.load %arg2[%c0_95, %c2] : memref<16x3xf32, #tpu.memory_space<vmem>>, vector<16x1xf32>
    %259 = arith.mulf %243, %255 : vector<16x1xf32>
    %260 = arith.subf %258, %259 : vector<16x1xf32>
    %261 = vector.broadcast %260 : vector<16x1xf32> to vector<16x256xf32>
    %262 = arith.addf %257, %261 : vector<16x256xf32>
    %cst_96 = arith.constant 0.000000e+00 : f32
    %263 = vector.broadcast %cst_96 : f32 to vector<16x256xf32>
    %264 = arith.maximumf %262, %263 : vector<16x256xf32>
    %c0_97 = arith.constant 0 : index
    %c0_98 = arith.constant 0 : index
    %265 = vector.load %arg3[%c0_97, %c0_98] : memref<8x144xf32, #tpu.memory_space<vmem>>, vector<8x144xf32>
    %c17_i32_99 = arith.constant 17 : i32
    %266 = tpu.dynamic_rotate %264 by %c17_i32_99 dim 1 : vector<16x256xf32>, i32 -> vector<16x256xf32>
    %cst_100 = arith.constant 0.000000e+00 : f32
    %267 = vector.shape_cast %24 : vector<1x256xi1> to vector<1x256xi1>
    %268 = vector.broadcast %267 : vector<1x256xi1> to vector<16x256xi1>
    %269 = vector.broadcast %cst_100 : f32 to vector<16x256xf32>
    %270 = arith.select %268, %266, %269 : vector<16x256xi1>, vector<16x256xf32>
    %c16_i32_101 = arith.constant 16 : i32
    %271 = tpu.dynamic_rotate %264 by %c16_i32_101 dim 1 : vector<16x256xf32>, i32 -> vector<16x256xf32>
    %cst_102 = arith.constant 0.000000e+00 : f32
    %272 = vector.shape_cast %43 : vector<1x256xi1> to vector<1x256xi1>
    %273 = vector.broadcast %272 : vector<1x256xi1> to vector<16x256xi1>
    %274 = vector.broadcast %cst_102 : f32 to vector<16x256xf32>
    %275 = arith.select %273, %271, %274 : vector<16x256xi1>, vector<16x256xf32>
    %c15_i32_103 = arith.constant 15 : i32
    %276 = tpu.dynamic_rotate %264 by %c15_i32_103 dim 1 : vector<16x256xf32>, i32 -> vector<16x256xf32>
    %cst_104 = arith.constant 0.000000e+00 : f32
    %277 = vector.shape_cast %62 : vector<1x256xi1> to vector<1x256xi1>
    %278 = vector.broadcast %277 : vector<1x256xi1> to vector<16x256xi1>
    %279 = vector.broadcast %cst_104 : f32 to vector<16x256xf32>
    %280 = arith.select %278, %276, %279 : vector<16x256xi1>, vector<16x256xf32>
    %c1_i32_105 = arith.constant 1 : i32
    %281 = tpu.dynamic_rotate %264 by %c1_i32_105 dim 1 : vector<16x256xf32>, i32 -> vector<16x256xf32>
    %cst_106 = arith.constant 0.000000e+00 : f32
    %282 = vector.shape_cast %81 : vector<1x256xi1> to vector<1x256xi1>
    %283 = vector.broadcast %282 : vector<1x256xi1> to vector<16x256xi1>
    %284 = vector.broadcast %cst_106 : f32 to vector<16x256xf32>
    %285 = arith.select %283, %281, %284 : vector<16x256xi1>, vector<16x256xf32>
    %cst_107 = arith.constant 0.000000e+00 : f32
    %286 = vector.shape_cast %100 : vector<1x256xi1> to vector<1x256xi1>
    %287 = vector.broadcast %286 : vector<1x256xi1> to vector<16x256xi1>
    %288 = vector.broadcast %cst_107 : f32 to vector<16x256xf32>
    %289 = arith.select %287, %264, %288 : vector<16x256xi1>, vector<16x256xf32>
    %c255_i32_108 = arith.constant 255 : i32
    %290 = tpu.dynamic_rotate %264 by %c255_i32_108 dim 1 : vector<16x256xf32>, i32 -> vector<16x256xf32>
    %cst_109 = arith.constant 0.000000e+00 : f32
    %291 = vector.shape_cast %119 : vector<1x256xi1> to vector<1x256xi1>
    %292 = vector.broadcast %291 : vector<1x256xi1> to vector<16x256xi1>
    %293 = vector.broadcast %cst_109 : f32 to vector<16x256xf32>
    %294 = arith.select %292, %290, %293 : vector<16x256xi1>, vector<16x256xf32>
    %c241_i32_110 = arith.constant 241 : i32
    %295 = tpu.dynamic_rotate %264 by %c241_i32_110 dim 1 : vector<16x256xf32>, i32 -> vector<16x256xf32>
    %cst_111 = arith.constant 0.000000e+00 : f32
    %296 = vector.shape_cast %138 : vector<1x256xi1> to vector<1x256xi1>
    %297 = vector.broadcast %296 : vector<1x256xi1> to vector<16x256xi1>
    %298 = vector.broadcast %cst_111 : f32 to vector<16x256xf32>
    %299 = arith.select %297, %295, %298 : vector<16x256xi1>, vector<16x256xf32>
    %c240_i32_112 = arith.constant 240 : i32
    %300 = tpu.dynamic_rotate %264 by %c240_i32_112 dim 1 : vector<16x256xf32>, i32 -> vector<16x256xf32>
    %cst_113 = arith.constant 0.000000e+00 : f32
    %301 = vector.shape_cast %157 : vector<1x256xi1> to vector<1x256xi1>
    %302 = vector.broadcast %301 : vector<1x256xi1> to vector<16x256xi1>
    %303 = vector.broadcast %cst_113 : f32 to vector<16x256xf32>
    %304 = arith.select %302, %300, %303 : vector<16x256xi1>, vector<16x256xf32>
    %c239_i32_114 = arith.constant 239 : i32
    %305 = tpu.dynamic_rotate %264 by %c239_i32_114 dim 1 : vector<16x256xf32>, i32 -> vector<16x256xf32>
    %cst_115 = arith.constant 0.000000e+00 : f32
    %306 = vector.shape_cast %176 : vector<1x256xi1> to vector<1x256xi1>
    %307 = vector.broadcast %306 : vector<1x256xi1> to vector<16x256xi1>
    %308 = vector.broadcast %cst_115 : f32 to vector<16x256xf32>
    %309 = arith.select %307, %305, %308 : vector<16x256xi1>, vector<16x256xf32>
    %310 = tpu.concatenate %270, %275, %280, %285, %289, %294, %299, %304, %309 in 0 : vector<16x256xf32>, vector<16x256xf32>, vector<16x256xf32>, vector<16x256xf32>, vector<16x256xf32>, vector<16x256xf32>, vector<16x256xf32>, vector<16x256xf32>, vector<16x256xf32> -> vector<144x256xf32>
    %cst_116 = arith.constant dense<0.000000e+00> : vector<8x256xf32>
    %311 = tpu.matmul %265, %310, %cst_116 {dimension_numbers = #tpu.dot_dimension_numbers<[1], [0], [0], [1], [0, 0, 1, 1], [], []>} : vector<8x144xf32>, vector<144x256xf32>, vector<8x256xf32> -> vector<8x256xf32>
    %c0_117 = arith.constant 0 : index
    %c0_118 = arith.constant 0 : index
    %312 = vector.load %arg4[%c0_117, %c0_118] : memref<8x3xf32, #tpu.memory_space<vmem>>, vector<8x1xf32>
    %313 = vector.broadcast %312 : vector<8x1xf32> to vector<8x256xf32>
    %314 = arith.addf %311, %313 : vector<8x256xf32>
    %315 = tpu.iota {dimensions = array<i32: 0>} : vector<8x8xi32>
    %316 = tpu.iota {dimensions = array<i32: 1>} : vector<8x8xi32>
    %c3_i32 = arith.constant 3 : i32
    %317 = vector.broadcast %c3_i32 : i32 to vector<8x8xi32>
    %318 = arith.andi %315, %317 : vector<8x8xi32>
    %c3_i32_119 = arith.constant 3 : i32
    %319 = vector.broadcast %c3_i32_119 : i32 to vector<8x8xi32>
    %320 = arith.andi %316, %319 : vector<8x8xi32>
    %321 = arith.cmpi eq, %318, %320 : vector<8x8xi32>
    %322 = arith.extui %321 : vector<8x8xi1> to vector<8x8xi32>
    %323 = arith.sitofp %322 : vector<8x8xi32> to vector<8x8xf32>
    %cst_120 = arith.constant dense<0.000000e+00> : vector<8xf32>
    %324 = vector.multi_reduction <add>, %314, %cst_120 [1] : vector<8x256xf32> to vector<8xf32>
    %325 = vector.shape_cast %324 : vector<8xf32> to vector<8x1xf32>
    %326 = arith.mulf %314, %314 : vector<8x256xf32>
    %cst_121 = arith.constant dense<0.000000e+00> : vector<8xf32>
    %327 = vector.multi_reduction <add>, %326, %cst_121 [1] : vector<8x256xf32> to vector<8xf32>
    %328 = vector.shape_cast %327 : vector<8xf32> to vector<8x1xf32>
    %cst_122 = arith.constant dense<0.000000e+00> : vector<8x1xf32>
    %329 = tpu.matmul %323, %325, %cst_122 {dimension_numbers = #tpu.dot_dimension_numbers<[1], [0], [0], [1], [0, 0, 1, 1], [], []>} : vector<8x8xf32>, vector<8x1xf32>, vector<8x1xf32> -> vector<8x1xf32>
    %cst_123 = arith.constant 0.001953125 : f32
    %330 = vector.broadcast %cst_123 : f32 to vector<8x1xf32>
    %331 = arith.mulf %329, %330 : vector<8x1xf32>
    %cst_124 = arith.constant dense<0.000000e+00> : vector<8x1xf32>
    %332 = tpu.matmul %323, %328, %cst_124 {dimension_numbers = #tpu.dot_dimension_numbers<[1], [0], [0], [1], [0, 0, 1, 1], [], []>} : vector<8x8xf32>, vector<8x1xf32>, vector<8x1xf32> -> vector<8x1xf32>
    %cst_125 = arith.constant 0.001953125 : f32
    %333 = vector.broadcast %cst_125 : f32 to vector<8x1xf32>
    %334 = arith.mulf %332, %333 : vector<8x1xf32>
    %335 = arith.mulf %331, %331 : vector<8x1xf32>
    %336 = arith.subf %334, %335 : vector<8x1xf32>
    %cst_126 = arith.constant 0.000000e+00 : f32
    %337 = vector.broadcast %cst_126 : f32 to vector<8x1xf32>
    %338 = arith.maximumf %336, %337 : vector<8x1xf32>
    %c0_127 = arith.constant 0 : index
    %c1_128 = arith.constant 1 : index
    %339 = vector.load %arg4[%c0_127, %c1_128] : memref<8x3xf32, #tpu.memory_space<vmem>>, vector<8x1xf32>
    %cst_129 = arith.constant 9.99999974E-6 : f32
    %340 = vector.broadcast %cst_129 : f32 to vector<8x1xf32>
    %341 = arith.addf %338, %340 : vector<8x1xf32>
    %342 = math.rsqrt %341 : vector<8x1xf32>
    %343 = arith.mulf %339, %342 : vector<8x1xf32>
    %344 = vector.broadcast %343 : vector<8x1xf32> to vector<8x256xf32>
    %345 = arith.mulf %314, %344 : vector<8x256xf32>
    %c0_130 = arith.constant 0 : index
    %c2_131 = arith.constant 2 : index
    %346 = vector.load %arg4[%c0_130, %c2_131] : memref<8x3xf32, #tpu.memory_space<vmem>>, vector<8x1xf32>
    %347 = arith.mulf %331, %343 : vector<8x1xf32>
    %348 = arith.subf %346, %347 : vector<8x1xf32>
    %349 = vector.broadcast %348 : vector<8x1xf32> to vector<8x256xf32>
    %350 = arith.addf %345, %349 : vector<8x256xf32>
    %351 = arith.addf %0, %350 : vector<8x256xf32>
    %cst_132 = arith.constant 0.000000e+00 : f32
    %352 = vector.broadcast %cst_132 : f32 to vector<8x256xf32>
    %353 = arith.maximumf %351, %352 : vector<8x256xf32>
    %c0_133 = arith.constant 0 : index
    %c0_134 = arith.constant 0 : index
    %354 = vector.load %arg5[%c0_133, %c0_134] : memref<8x256xf32, #tpu.memory_space<vmem>>, vector<8x256xf32>
    tpu.vector_store %arg5[%c0_133, %c0_134], %353 {strides = array<i32>} : memref<8x256xf32, #tpu.memory_space<vmem>>, vector<8x256xf32>,
    return
  }
}

</mosaic_0001>

<bundles_post_ra>
// kernel: resblock_forward.1
= control target key start
LH: loop header
LB: loop body
LE: loop exit
PB: predicated region body
PF: predicated region fallthrough
CT: control target
= control target key end

     0   :  { %s1320_s22 = smov 15   ;;  %s1321_s23 = smov 17   ;;  %v1328_v3 = vmov 0.0   ;;  %v1329_v4 = vmov 0   ;;  %v22_v7 = vlaneseq  ;;  %v1969_v19 = vmov 0  ;;  %s1934_s0 = inlined_call_operand.vmem [shape: f32[8,256], index: 0, kind: input, shape index: {}]   ;;  %s1935_s2 = inlined_call_operand.vmem [shape: f32[16,3], index: 2, kind: input, shape index: {}]   ;;  %s1936_s1 = inlined_call_operand.vmem [shape: f32[16,72], index: 1, kind: input, shape index: {}]   ;;  %s1937_s3 = inlined_call_operand.vmem [shape: f32[8,144], index: 3, kind: input, shape index: {}]   ;;  %s1938_s4 = inlined_call_operand.vmem [shape: f32[8,3], index: 4, kind: input, shape index: {}]   ;;  %s1939_s5 = inlined_call_operand.vmem [shape: f32[8,256], index: 5, kind: output, shape index: {}]  }
   0x1   :  { %v1367_v0 = vld [vmem:[%s1934_s0] sm:$0xff]  ;;  %v1372_v1 = vld [vmem:[%s1934_s0 + $0x8] sm:$0xff]  ;;  %s1322_s24 = smov 1   ;;  %s1323_s25 = smov 16   ;;  %298 = vmatprep.mubr.f32.mxu0 %v1328_v3  ;;  %1223 = vset.pattern.permute.xlu1 %v1329_v4  ;;  %v1971_v21 = vmov 0  ;;  %v1973_v22 = vmov 0 }
   0x2   :  { %v1198_v2 = vpack.i.bf16 %v1372_v1, %v1367_v0  ;;  %s1324_s26 = smov 127   ;;  %s1325_s27 = smov 113   ;;  %v1392_v5 = vld [vmem:[%s1935_s2] sm:$0xff]  ;;  %1224 = vset.pattern.permute.xlu0 %v1329_v4  ;;  %v1398_v6 = vld [vmem:[%s1935_s2 + $0x8] sm:$0xff]  ;;  %v1403_v8 = vand.u32 127, %v22_v7  ;;  %v1975_v23 = vmov 0 }
   0x3   :  { %s1326_s28 = smov 112   ;;  %s1327_s29 = smov 111   ;;  %v1977_v24 = vmov 0  ;;  %v1979_v25 = vmov 0  ;;  %v1982_v26 = vmov 0  ;;  %v1987_v29 = vmov 0 }
   0x4   :  { %1199 = vrot.lane.b32.xlu1 %v1198_v2, %s1320_s22  ;;  %1189 = vrot.lane.b32.xlu0 %v1198_v2, %s1321_s23  ;;  %v24_v9 = vadd.s32 128, %v1403_v8  ;;  %v25_v12 = vand.u32 15, %v1403_v8  ;;  %v1408_v13 = vshra.s32 %v1403_v8, 4  ;;  %v1991_v31 = vmov 0 }
   0x5   :  { %v1994_v36 = vmov 0  ;;  %v2012_v61 = vmov 0 }
   0x6   :  { %v26_v10 = vand.u32 15, %v24_v9  ;;  %v28_v11 = vshra.s32 %v24_v9, 4  ;;  %v1412_v16 = vadd.s32 4294967295, %v25_v12  ;;  %v37_v17 = vadd.s32 4294967295, %v1408_v13 }
   0x7   :  { %v1429_v20 = vadd.s32 1, %v25_v12  ;;  %v1519_v39 = vadd.s32 1, %v1408_v13 }
   0x8   :  { %1204 = vrot.lane.b32.xlu1 %v1198_v2, %s1322_s24  ;;  %1194 = vrot.lane.b32.xlu0 %v1198_v2, %s1323_s25  ;;  %v1410_v14 = vadd.s32 4294967295, %v26_v10  ;;  %v38_v15 = vadd.s32 4294967295, %v28_v11  ;;  %vm1940_vm2 = vcmp.ge.s32.totalorder %v1412_v16, 0  ;;  %vm39_vm3 = vcmp.ge.s32.totalorder %v37_v17, 0 }
   0x9   :  { %v1417_v18 = vadd.s32 1, %v26_v10  ;;  %vm41_vm6 = vmand %vm1940_vm2, %vm39_vm3  ;;  %vm43_vm7 = vcmp.lt.s32.totalorder %v37_v17, 16  ;;  %vm1944_vm12 = vcmp.ge.s32.totalorder %v28_v11, 0  ;;  %vm1945_vm15 = vcmp.lt.s32.totalorder %v1429_v20, 16 }
   0xa   :  { %vm1943_vm0 = vcmp.ge.s32.totalorder %v1410_v14, 0  ;;  %vm40_vm1 = vcmp.ge.s32.totalorder %v38_v15, 0  ;;  %vm44_vm5 = vcmp.lt.s32.totalorder %v38_v15, 16  ;;  %vm1436_vm11 = vmand %vm41_vm6, %vm43_vm7  ;;  %vm1946_vm6 = vcmp.lt.s32.totalorder %v28_v11, 16 }
   0xb   :  { %vm42_vm4 = vmand %vm1943_vm0, %vm40_vm1  ;;  %vm1942_vm9 = vcmp.lt.s32.totalorder %v1417_v18, 16  ;;  %v1974_v22 = vsel %vm1436_vm11, 4294967295, %v1973_v22  ;;  %vm1947_vm11 = vcmp.ge.s32.totalorder %v1408_v13, 0  ;;  %v1492_v30 = vadd.s32 1, %v28_v11 }
   0xc   :  { %1209 = vrot.lane.b32.xlu0 %v1198_v2, %s1324_s26  ;;  %1214 = vrot.lane.b32.xlu1 %v1198_v2, %s1325_s27  ;;  %vm1424_vm8 = vmand %vm42_vm4, %vm44_vm5 }
   0xd   :  { %v1970_v19 = vsel %vm1424_vm8, 4294967295, %v1969_v19  ;;  %vm1431_vm10 = vmand %vm40_vm1, %vm44_vm5 }
   0xe   :  { %v1972_v21 = vsel %vm1431_vm10, 4294967295, %v1971_v21  ;;  %vm66_vm13 = vmand %vm1942_vm9, %vm40_vm1 }
   0xf   :  { %vm1444_vm14 = vmand %vm39_vm3, %vm43_vm7 }
  0x10   :  { %1219 = vrot.lane.b32.xlu0 %v1198_v2, %s1326_s28  ;;  %202 = vrot.lane.b32.xlu1 %v1367_v0, %s1327_s29  ;;  %v1976_v23 = vsel %vm1444_vm14, 4294967295, %v1975_v23  ;;  %vm72_vm4 = vmand %vm1943_vm0, %vm1944_vm12  ;;  %vm1981_vm0 = vcmp.ge.s32.totalorder %v1412_v16, 0 }
  0x11   :  { %vm1452_vm2 = vmand %vm66_vm13, %vm44_vm5  ;;  %vm1950_vm5 = vcmp.lt.s32.totalorder %v1408_v13, 16 }
  0x12   :  { %v1978_v24 = vsel %vm1452_vm2, 4294967295, %v1977_v24  ;;  %vm65_vm1 = vmand %vm1945_vm15, %vm39_vm3  ;;  %vm1985_vm15 = vcmp.lt.s32.totalorder %v1417_v18, 16 }
  0x13   :  { %vm1461_vm9 = vmand %vm72_vm4, %vm1946_vm6  ;;  %vm1984_vm4 = vcmp.ge.s32.totalorder %v28_v11, 0 }
  0x14   :  { %204 = vrot.lane.b32.xlu0 %v1372_v1, %s1327_s29  ;;  %219 = vperm.xlu1 %1223, %v1392_v5   ;;  %v1980_v25 = vsel %vm1461_vm9, 4294967295, %v1979_v25  ;;  %vm71_vm12 = vmand %vm1981_vm0, %vm1947_vm11  ;;  %vm1986_vm0 = vnez %v1974_v22  ;;  %vm1956_vm11 = vcmp.lt.s32.totalorder %v1403_v8, 17 }
  0x15   :  { %vm1471_vm13 = vmand %vm65_vm1, %vm43_vm7  ;;  %vm1989_vm1 = vcmp.lt.s32.totalorder %v28_v11, 16 }
  0x16   :  { %v1983_v26 = vsel %vm1471_vm13, 4294967295, %v1982_v26  ;;  %vm82_vm6 = vmand %vm1985_vm15, %vm1984_vm4  ;;  %vm2000_vm13 = vcmp.lt.s32.totalorder %v1403_v8, 1 }
  0x17   :  { %vm1488_vm7 = vmand %vm71_vm12, %vm1950_vm5  ;;  %vm1953_vm12 = vcmp.lt.s32.totalorder %v1403_v8, 15 }
  0x18   :  { %224 = vperm.xlu0 %1224, %v1398_v6   ;;  %v1988_v29 = vsel %vm1488_vm7, 4294967295, %v1987_v29  ;;  %vm1990_vm3 = vmmov %vm1984_vm4 }
  0x19   :  { %vm1496_vm8 = vmand %vm1990_vm3, %vm1989_vm1  ;;  %vm2001_vm3 = vcmp.lt.s32.totalorder %v1403_v8, 16 }
  0x1a   :  { %v1992_v31 = vsel %vm1496_vm8, 4294967295, %v1991_v31  ;;  %vm1993_vm15 = vmmov %vm1989_vm1  ;;  %vm2003_vm8 = vcmp.ge.s32.totalorder %v1492_v30, 0 }
  0x1b   :  { %vm1501_vm4 = vmand %vm82_vm6, %vm1993_vm15  ;;  %vm1996_vm6 = vcmp.ge.s32.totalorder %v1408_v13, 0  ;;  %vm1997_vm15 = vcmp.lt.s32.totalorder %v1429_v20, 16 }
  0x1c   :  { %v1995_v36 = vsel %vm1501_vm4, 4294967295, %v1994_v36  ;;  %vm1533_vm5 = vmand %vm1997_vm15, %vm1996_vm6  ;;  %vm2004_vm6 = vcmp.ge.s32.totalorder %v1410_v14, 0  ;;  %vm2024_vm4 = vcmp.ge.s32.totalorder %v1492_v30, 0 }
  0x1d   :  { %vm1550_vm15 = vmand %vm2004_vm6, %vm2003_vm8 }
  0x76   :  { %v1200_v27 = vpop.permute.xlu1 %1199  ;;  %v1190_v28 = vpop.permute.xlu0 %1189 }
  0x77   :  { %v1202_v32 = vunpack.i.h.bf16 %v1200_v27  ;;  %v1201_v33 = vunpack.i.l.bf16 %v1200_v27  ;;  %v1192_v34 = vunpack.i.h.bf16 %v1190_v28  ;;  %v1191_v35 = vunpack.i.l.bf16 %v1190_v28 }
  0x79   :  { %v136_v44 = vsel %vm1953_vm12, %v1201_v33, %v1202_v32  ;;  %v110_v45 = vsel %vm1956_vm11, %v1191_v35, %v1192_v34  ;;  %v111_v49 = vsel %vm1956_vm11, %v1192_v34, %v1191_v35  ;;  %vm2002_vm12 = vmmov %vm2001_vm3  ;;  %vm2008_vm11 = vcmp.ge.s32.totalorder %v1408_v13, 0 }
  0x7a   :  { %v1205_v37 = vpop.permute.xlu1 %1204  ;;  %v1195_v38 = vpop.permute.xlu0 %1194  ;;  %v2043_v35 = vmov 0 }
  0x7b   :  { %v1207_v40 = vunpack.i.h.bf16 %v1205_v37  ;;  %v1206_v41 = vunpack.i.l.bf16 %v1205_v37  ;;  %v1197_v42 = vunpack.i.h.bf16 %v1195_v38  ;;  %v1196_v43 = vunpack.i.l.bf16 %v1195_v38 }
  0x7d   :  { %v149_v47 = vsel %vm2000_vm13, %v1206_v41, %v1207_v40  ;;  %v123_v48 = vsel %vm2001_vm3, %v1196_v43, %v1197_v42  ;;  %v124_v50 = vsel %vm2002_vm12, %v1197_v42, %v1196_v43  ;;  %vm2007_vm3 = vcmp.lt.s32.totalorder %v1408_v13, 16  ;;  %v103_v43 = vld [vmem:[%s1936_s1] sm:$0xff] }
  0x7e   :  { %v1088_v52 = vpack.c.bf16 %v123_v48, %v110_v45  ;;  %v1091_v53 = vpack.c.bf16 %v124_v50, %v111_v49  ;;  %v1210_v54 = vpop.permute.xlu0 %1209  ;;  %v1215_v55 = vpop.permute.xlu1 %1214  ;;  %vm1559_vm1 = vmand %vm2008_vm11, %vm2007_vm3  ;;  %vm2014_vm13 = vcmp.lt.s32.totalorder %v1403_v8, 15  ;;  %vm2015_vm11 = vcmp.lt.s32.totalorder %v1403_v8, 1 }
  0x7f   :  { %v1212_v57 = vunpack.i.h.bf16 %v1210_v54  ;;  %v1211_v58 = vunpack.i.l.bf16 %v1210_v54  ;;  %v1217_v59 = vunpack.i.h.bf16 %v1215_v55  ;;  %v1216_v60 = vunpack.i.l.bf16 %v1215_v55  ;;  %vm2011_vm8 = vmmov %vm2007_vm3 }
  0x80   :  { %vm1568_vm6 = vmand %vm1533_vm5, %vm2011_vm8  ;;  %v137_v62 = vsel %vm2014_vm13, %v1202_v32, %v1201_v33  ;;  %v150_v63 = vsel %vm2015_vm11, %v1207_v40, %v1206_v41  ;;  %v1094_v2 = vpack.c.bf16 %v149_v47, %v136_v44  ;;  %vm2016_vm3 = vnez %v1970_v19 }
  0x81   :  { %v2013_v61 = vsel %vm1568_vm6, 4294967295, %v2012_v61  ;;  %vm2017_vm12 = vmpackc.low %vm1431_vm10, %vm2016_vm3  ;;  %vm2018_vm5 = vcmp.lt.s32.totalorder %v1492_v30, 16  ;;  %vm2022_vm11 = vcmp.lt.s32.totalorder %v1403_v8, 127  ;;  %v1097_v15 = vpack.c.bf16 %v150_v63, %v137_v62 }
  0x82   :  { %1090 = vmatprep.subr.msk.bf16.mxu0 %vm2017_vm12, %v1088_v52  ;;  %vm1586_vm8 = vmand %vm1550_vm15, %vm2018_vm5  ;;  %v169_v10 = vsel %vm2022_vm11, %v1212_v57, %v1211_v58  ;;  %v1220_v14 = vpop.permute.xlu0 %1219  ;;  %v203_v37 = vpop.permute.xlu1 %202  ;;  %v1731_v63 = vshrl.u32 %v22_v7, 7 }
  0x83   :  { %vm2021_vm13 = vmpackc.low %vm1444_vm14, %vm1986_vm0  ;;  %v1100_v13 = vpack.c.bf16 %v169_v10, %v1372_v1  ;;  %vm1965_vm14 = vcmp.lt.s32.totalorder %v1519_v39, 16  ;;  %v1222_v17 = vunpack.i.h.bf16 %v1220_v14  ;;  %v1221_v27 = vunpack.i.l.bf16 %v1220_v14 }
  0x84   :  { %1093 = vmatpush1.bf16.msk.msra.mxu0 %vm2021_vm13, %v1091_v53  ;;  %vm2023_vm12 = vmmov %vm2018_vm5  ;;  %vm1968_vm0 = vcmp.lt.s32.totalorder %v1403_v8, 111  ;;  %v316_v10 = vand.u32 7, %v1403_v8 }
  0x85   :  { %vm1601_vm10 = vmand %vm2024_vm4, %vm2023_vm12  ;;  %vm2030_vm4 = vcmp.ge.s32.totalorder %v1412_v16, 0 }
  0x86   :  { %vm2027_vm15 = vmmov %vm2022_vm11  ;;  %vm2029_vm11 = vcmp.ge.s32.totalorder %v1519_v39, 0  ;;  %v205_v38 = vpop.permute.xlu0 %204 }
  0x87   :  { %v168_v12 = vsel %vm2027_vm15, %v1211_v58, %v1212_v57  ;;  %vm2028_vm5 = vmpackc.low %vm1461_vm9, %vm1452_vm2  ;;  %vm2031_vm15 = vcmp.lt.s32.totalorder %v1403_v8, 113  ;;  %vm2039_vm2 = vnez %v1995_v36  ;;  %v208_v41 = vsel %vm1968_vm0, %v205_v38, %v203_v37 }
  0x88   :  { %1096 = vmatprep.subr.msk.bf16.mxu0 %vm2028_vm5, %v1094_v2  ;;  %vm89_vm12 = vmand %vm2030_vm4, %vm2029_vm11  ;;  %v182_v1 = vsel %vm2031_vm15, %v1217_v59, %v1216_v60  ;;  %v1103_v16 = vpack.c.bf16 %v168_v12, %v1367_v0  ;;  %vm2032_vm11 = vnez %v1983_v26  ;;  %vm2034_vm15 = vcmp.lt.s32.totalorder %v1403_v8, 112 }
  0x89   :  { %vm2033_vm4 = vmpackc.low %vm1488_vm7, %vm2032_vm11  ;;  %v195_v28 = vsel %vm2034_vm15, %v1222_v17, %v1221_v27  ;;  %vm2037_vm5 = vcmp.lt.s32.totalorder %v1403_v8, 113  ;;  %vm2046_vm11 = vcmp.lt.s32.totalorder %v1417_v18, 16  ;;  %v207_v42 = vsel %vm1968_vm0, %v203_v37, %v205_v38  ;;  %v570_v18 = vld [vmem:[%s1937_s3] sm:$0xff] }
  0x8a   :  { %1099 = vmatpush1.bf16.msk.msra.mxu0 %vm2033_vm4, %v1097_v15  ;;  %vm1639_vm9 = vmand %vm89_vm12, %vm1965_vm14  ;;  %v181_v33 = vsel %vm2037_vm5, %v1216_v60, %v1217_v59  ;;  %v1106_v34 = vpack.c.bf16 %v195_v28, %v182_v1  ;;  %vm2040_vm4 = vnez %v1992_v31  ;;  %vm2042_vm12 = vcmp.ge.s32.totalorder %v1519_v39, 0 }
  0x8b   :  { %vm2038_vm13 = vmmov %vm2034_vm15  ;;  %vm2045_vm5 = vcmp.ge.s32.totalorder %v1492_v30, 0  ;;  %v314_v2 = vand.u32 7, %v1731_v63 }
  0x8c   :  { %v194_v0 = vsel %vm2038_vm13, %v1221_v27, %v1222_v17  ;;  %vm2041_vm7 = vmpackc.low %vm2039_vm2, %vm2040_vm4 }
  0x8d   :  { %1102 = vmatprep.subr.msk.bf16.mxu0 %vm2041_vm7, %v1100_v13  ;;  %vm1656_vm15 = vmand %vm2042_vm12, %vm1965_vm14  ;;  %v1109_v40 = vpack.c.bf16 %v194_v0, %v181_v33  ;;  %v313_v13 = vadd.s32 8, %v1731_v63 }
  0x8e   :  { %v2044_v35 = vsel %vm1656_vm15, 4294967295, %v2043_v35  ;;  %vm100_vm13 = vmand %vm2046_vm11, %vm2045_vm5  ;;  %vm2049_vm5 = vcmp.lt.s32.totalorder %v1492_v30, 16  ;;  %v784_v30 = vand.u32 3, %v1731_v63 }
  0x8f   :  { %vm2047_vm7 = vmpackc.low %vm1568_vm6, %vm1559_vm1  ;;  %vm2053_vm6 = vcmp.lt.s32.totalorder %v1429_v20, 16  ;;  %v104_v20 = vld [vmem:[%s1936_s1 + $0x8] sm:$0xff]  ;;  %v315_v14 = vand.u32 7, %v313_v13  ;;  %s1331_s1 = smov 2   ;;  %v1332_v13 = vmov 2  }
  0x90   :  { %1105 = vmatpush1.bf16.msk.msra.mxu0 %vm2047_vm7, %v1103_v16  ;;  %vm1110_vm12 = vmpackc.low %vm1656_vm15, %vm1639_vm9  ;;  %vm2052_vm7 = vcmp.ge.s32.totalorder %v1519_v39, 0 }
  0x91   :  { %vm2048_vm11 = vmpackc.low %vm1601_vm10, %vm1586_vm8 }
  0x92   :  { %1108 = vmatprep.subr.msk.bf16.mxu0 %vm2048_vm11, %v1106_v34  ;;  %vm1681_vm14 = vmand %vm100_vm13, %vm2049_vm5  ;;  %vm2054_vm13 = vcmp.lt.s32.totalorder %v1519_v39, 16  ;;  %vm227_vm5 = vcmask 588800  }
  0x93   :  { %vm99_vm15 = vmand %vm2053_vm6, %vm2052_vm7  ;;  %v220_v39 = vpop.permute.xlu1 %219  ;;  %vm317_vm6 = vcmp.eq.s32.totalorder %v314_v2, %v316_v10  ;;  %vm2057_vm7 = vcmp.lt.s32.totalorder %v1403_v8, 17 }
  0x94   :  { %1111 = vmatpush1.bf16.msk.msra.mxu0 %vm1110_vm12, %v1109_v40  ;;  %vm1697_vm11 = vmand %vm99_vm15, %vm2054_vm13  ;;  %v1006_v12 = vsel %vm317_vm6, 1.0, %v1328_v3  ;;  %vm339_vm15 = vcmask 130048   ;;  %vm318_vm12 = vcmp.eq.s32.totalorder %v315_v14, %v316_v10 }
  0x95   :  { %1002 = vmatprep.subr.msk.mxu0 %vm1681_vm14, %v208_v41  ;;  %v1007_v16 = vsel %vm318_vm12, 1.0, %v1328_v3  ;;  %vm2058_vm13 = vmmov %vm2057_vm7  ;;  %vm2061_vm12 = vnez %v1974_v22 }
  0x96   :  { %vm2059_vm6 = vmmov %vm2057_vm7 }
  0x97   :  { %v225_v48 = vpop.permute.xlu0 %224 }
  0x98   :  { %1003 = vmatpush1.msk.msra.mxu0 %vm1697_vm11, %v207_v42 }
  0x99   :  { %1004 = vmatmul.mubr.msk.f32.vlgmr.msra.gmra.mrb[0].mxu0 %vm227_vm5, %v103_v43 }
  0x9a   :  { %304 = vmatprep.mubr.f32.mxu0 %v1328_v3 }
  0x9d   :  { %1005 = vmatmul.mubr.msk.f32.gmra.mrb[2].mxu0 %vm227_vm5, %v104_v20  ;;  %vm1121_vm5 = vmpackc.low %vm2016_vm3, %vm2016_vm3  ;;  %vm2062_vm3 = vnez %v1972_v21 }
  0x9e   :  { %1068 = vmatprep.mubr.msk.f32.mxu0 %vm339_vm15, %v1006_v12 }
 0x16c   :  { %v300_v44 = vpop.f32.mrb[0].mxu0 }
 0x16d   :  { %v1710_v45 = vadd.f32 %v300_v44, %v220_v39  ;;  %v302_v46 = vpop.f32.mrb[1].mxu0 }
 0x16e   :  { %v1712_v47 = vadd.f32 %v302_v46, %v220_v39 }
 0x16f   :  { %v329_v51 = vmul.f32 %v1710_v45, %v1710_v45 }
 0x170   :  { %v306_v49 = vpop.f32.mrb[2].mxu0  ;;  %v323_v50 = vadd.f32 %v1712_v47, %v1710_v45  ;;  %v330_v52 = vmul.f32 %v1712_v47, %v1712_v47 }
 0x171   :  { %v1720_v53 = vadd.f32 %v306_v49, %v225_v48  ;;  %v308_v54 = vpop.f32.mrb[3].mxu0 }
 0x172   :  { %v1722_v55 = vadd.f32 %v308_v54, %v225_v48  ;;  %324 = vadd.xlane.f32.xlu1 %v323_v50  ;;  %v333_v58 = vadd.f32 %v330_v52, %v329_v51  ;;  %v1330_v54 = vmov 1  }
 0x173   :  { %v331_v59 = vmul.f32 %v1720_v53, %v1720_v53  ;;  %1225 = vset.pattern.permute.xlu0 %v1330_v54  ;;  %1226 = vset.pattern.permute.xlu1 %v1330_v54 }
 0x174   :  { %v326_v57 = vadd.f32 %v1722_v55, %v1720_v53  ;;  %v332_v60 = vmul.f32 %v1722_v55, %v1722_v55 }
 0x176   :  { %327 = vadd.xlane.f32.xlu0 %v326_v57  ;;  %334 = vadd.xlane.f32.xlu1 %v333_v58  ;;  %v336_v62 = vadd.f32 %v332_v60, %v331_v59 }
 0x17a   :  { %337 = vadd.xlane.f32.xlu0 %v336_v62 }
 0x1ff   :  { %v325_v15 = vpop.xlane.xlu1 %324 }
 0x203   :  { %v328_v1 = vpop.xlane.xlu0 %327  ;;  %v335_v7 = vpop.xlane.xlu1 %334 }
 0x204   :  { %v1112_v17 = vpack.c.bf16 %v328_v1, %v325_v15 }
 0x206   :  { %1113 = vmatprep.subr.bf16.mxu0 %v1112_v17 }
 0x207   :  { %v338_v27 = vpop.xlane.xlu0 %337  ;;  %1115 = vmatpush3.bf16.msra.mxu0 %v1112_v17 }
 0x208   :  { %v1116_v28 = vpack.c.bf16 %v338_v27, %v335_v7 }
 0x20a   :  { %1069 = vmatmul.mubr.msk.f32.vlgmr.msra.gmra.mrb[4].mxu0 %vm339_vm15, %v1007_v16  ;;  %1117 = vmatprep.subr.bf16.mxu0 %v1116_v28 }
 0x20b   :  { %1119 = vmatpush3.bf16.msra.mxu0 %v1116_v28  ;;  %1075 = vmatprep.mubr.msk.f32.mxu0 %vm339_vm15, %v1006_v12 }
 0x20c   :  { %1078 = vmatprep.subr.mxu0 %v1328_v3 }
 0x20e   :  { %1076 = vmatmul.mubr.msk.f32.vlgmr.msra.gmra.mrb[6].mxu0 %vm339_vm15, %v1007_v16 }
 0x2dd   :  { %v1070_v33 = vpop.f32.mrb[4].mxu0 }
 0x2de   :  { %v422_v0 = vmul.f32 0.001953125, %v1070_v33  ;;  %v412_v34 = vpop.f32.mrb[5].mxu0 }
 0x2df   :  { %v421_v37 = vmul.f32 0.001953125, %v412_v34 }
 0x2e0   :  { %v501_v40 = vmul.f32 %v422_v0, %v422_v0 }
 0x2e1   :  { %v1077_v38 = vpop.f32.mrb[6].mxu0  ;;  %v500_v43 = vmul.f32 %v421_v37, %v421_v37 }
 0x2e2   :  { %v499_v41 = vmul.f32 0.001953125, %v1077_v38  ;;  %v489_v42 = vpop.f32.mrb[7].mxu0 }
 0x2e3   :  { %v498_v20 = vmul.f32 0.001953125, %v489_v42 }
 0x2e4   :  { %v503_v39 = vsub.f32 %v499_v41, %v501_v40 }
 0x2e5   :  { %v502_v44 = vsub.f32 %v498_v20, %v500_v43 }
 0x2e6   :  { %v505_v46 = vmax.f32 %v503_v39, 0.0  ;;  %v1785_v39 = vld [vmem:[%s1938_s4] sm:$0xff] }
 0x2e7   :  { %v504_v48 = vmax.f32 %v502_v44, 0.0 }
 0x2e8   :  { %v507_v49 = vadd.f32 1e-05, %v505_v46 }
 0x2e9   :  { %v506_v50 = vadd.f32 1e-05, %v504_v48 }
 0x2ea   :  { %1312 = vrsqrt.f32 %v507_v49 }
 0x2eb   :  { %1314 = vrsqrt.f32 %v506_v50 }
 0x2f4   :  { %v1313_v51 = vpop.eup %1312 }
 0x2f5   :  { %v1315_v52 = vpop.eup %1314  ;;  %514 = vrot.lane.b32.xlu0 %v1313_v51, %s1322_s24 }
 0x2f6   :  { %512 = vrot.lane.b32.xlu1 %v1315_v52, %s1322_s24 }
 0x367   :  { %v515_v59 = vpop.permute.xlu0 %514 }
 0x368   :  { %v513_v57 = vpop.permute.xlu1 %512  ;;  %v519_v60 = vmul.f32 %v515_v59, %v1398_v6 }
 0x369   :  { %v518_v58 = vmul.f32 %v513_v57, %v1392_v5 }
 0x36b   :  { %534 = vrot.lane.b32.xlu1 %v518_v58, %s1324_s26 }
 0x36f   :  { %536 = vrot.lane.b32.xlu1 %v519_v60, %s1324_s26 }
 0x3dd   :  { %v535_v62 = vpop.permute.xlu1 %534 }
 0x3de   :  { %v540_v2 = vmul.f32 %v535_v62, %v421_v37 }
 0x3e0   :  { %544 = vrot.lane.b32.xlu0 %v540_v2, %s1331_s1 }
 0x3e1   :  { %v537_v10 = vpop.permute.xlu1 %536 }
 0x3e2   :  { %v541_v12 = vmul.f32 %v537_v10, %v422_v0 }
 0x3e4   :  { %522 = vperm.xlu0 %1225, %v518_v58   ;;  %546 = vrot.lane.b32.xlu1 %v541_v12, %s1331_s1 }
 0x3e8   :  { %527 = vperm.xlu1 %1226, %v519_v60   ;;  %1228 = vset.pattern.permute.xlu0 %v1332_v13 }
 0x3ec   :  { %1227 = vset.pattern.permute.xlu1 %v1332_v13 }
 0x452   :  { %v545_v14 = vpop.permute.xlu0 %544 }
 0x453   :  { %v550_v15 = vsub.f32 %v1392_v5, %v545_v14 }
 0x455   :  { %554 = vperm.xlu1 %1227, %v550_v15  }
 0x456   :  { %v547_v1 = vpop.permute.xlu1 %546 }
 0x457   :  { %v551_v17 = vsub.f32 %v1398_v6, %v547_v1 }
 0x459   :  { %559 = vperm.xlu0 %1228, %v551_v17   ;;  %1310 = vset.pattern.permute.xlu1 %v1330_v54 }
 0x45d   :  { %1309 = vset.pattern.permute.xlu0 %v1329_v4 }
 0x463   :  { %v523_v27 = vpop.permute.xlu0 %522 }
 0x464   :  { %v530_v28 = vmul.f32 %v523_v27, %v1710_v45  ;;  %v531_v5 = vmul.f32 %v523_v27, %v1712_v47  ;;  %v571_v47 = vld [vmem:[%s1937_s3 + $0x8] sm:$0xff] }
 0x465   :  { %1048 = vmatprep.mubr.msk.f32.mxu1 %vm339_vm15, %v571_v47  ;;  %vm2060_vm15 = vmmov %vm2059_vm6 }
 0x467   :  { %v528_v7 = vpop.permute.xlu1 %527 }
 0x468   :  { %v532_v33 = vmul.f32 %v528_v7, %v1720_v53  ;;  %v533_v0 = vmul.f32 %v528_v7, %v1722_v55 }
 0x4d4   :  { %v555_v16 = vpop.permute.xlu1 %554 }
 0x4d5   :  { %v562_v34 = vadd.f32 %v555_v16, %v530_v28  ;;  %v563_v6 = vadd.f32 %v555_v16, %v531_v5 }
 0x4d7   :  { %v566_v41 = vmax.f32 %v562_v34, 0.0  ;;  %v567_v20 = vmax.f32 %v563_v6, 0.0 }
 0x4d8   :  { %v560_v37 = vpop.permute.xlu0 %559 }
 0x4d9   :  { %v564_v38 = vadd.f32 %v560_v37, %v532_v33  ;;  %v565_v40 = vadd.f32 %v560_v37, %v533_v0 }
 0x4db   :  { %v568_v42 = vmax.f32 %v564_v38, 0.0  ;;  %v569_v43 = vmax.f32 %v565_v40, 0.0 }
 0x4dd   :  { %v1239_v4 = vpack.i.bf16 %v568_v42, %v566_v41  ;;  %v1234_v45 = vpack.i.bf16 %v569_v43, %v567_v20  ;;  %v1760_v53 = vpack.c.bf16 %v569_v43, %v567_v20  ;;  %v1762_v55 = vpack.c.bf16 %v568_v42, %v566_v41 }
 0x4df   :  { %1240 = vrot.lane.b32.xlu0 %v1239_v4, %s1323_s25  ;;  %1230 = vrot.lane.b32.xlu1 %v1239_v4, %s1321_s23 }
 0x4e3   :  { %1250 = vrot.lane.b32.xlu0 %v1239_v4, %s1320_s22  ;;  %1235 = vrot.lane.b32.xlu1 %v1234_v45, %s1321_s23 }
 0x4e7   :  { %1260 = vrot.lane.b32.xlu0 %v1239_v4, %s1322_s24  ;;  %1245 = vrot.lane.b32.xlu1 %v1234_v45, %s1323_s25 }
 0x4eb   :  { %1270 = vrot.lane.b32.xlu0 %v1239_v4, %s1324_s26  ;;  %1255 = vrot.lane.b32.xlu1 %v1234_v45, %s1320_s22 }
 0x4ef   :  { %1280 = vrot.lane.b32.xlu0 %v1239_v4, %s1325_s27  ;;  %1265 = vrot.lane.b32.xlu1 %v1234_v45, %s1322_s24 }
 0x4f3   :  { %1290 = vrot.lane.b32.xlu0 %v1239_v4, %s1326_s28  ;;  %1275 = vrot.lane.b32.xlu1 %v1234_v45, %s1324_s26 }
 0x4f7   :  { %1300 = vrot.lane.b32.xlu0 %v1239_v4, %s1327_s29  ;;  %1285 = vrot.lane.b32.xlu1 %v1234_v45, %s1325_s27 }
 0x4fb   :  { %1295 = vrot.lane.b32.xlu1 %v1234_v45, %s1326_s28  ;;  %707 = vperm.xlu0 %1309, %v1785_v39  }
 0x4ff   :  { %1305 = vrot.lane.b32.xlu1 %v1234_v45, %s1327_s29  ;;  %1311 = vset.pattern.permute.xlu0 %v1332_v13 }
 0x551   :  { %v1241_v44 = vpop.permute.xlu0 %1240  ;;  %v1231_v46 = vpop.permute.xlu1 %1230 }
 0x552   :  { %v1233_v50 = vunpack.i.h.bf16 %v1231_v46  ;;  %v1232_v51 = vunpack.i.l.bf16 %v1231_v46  ;;  %v1243_v13 = vunpack.i.h.bf16 %v1241_v44  ;;  %v1242_v14 = vunpack.i.l.bf16 %v1241_v44 }
 0x555   :  { %v1251_v48 = vpop.permute.xlu0 %1250  ;;  %v1236_v49 = vpop.permute.xlu1 %1235 }
 0x556   :  { %v1238_v52 = vunpack.i.h.bf16 %v1236_v49  ;;  %v1237_v54 = vunpack.i.l.bf16 %v1236_v49  ;;  %v1253_v21 = vunpack.i.h.bf16 %v1251_v48  ;;  %v1252_v0 = vunpack.i.l.bf16 %v1251_v48 }
 0x558   :  { %v580_v57 = vsel %vm2057_vm7, %v1232_v51, %v1237_v54  ;;  %v581_v58 = vsel %vm2058_vm13, %v1233_v50, %v1238_v52  ;;  %v582_v59 = vsel %vm2059_vm6, %v1237_v54, %v1232_v51  ;;  %v583_v60 = vsel %vm2060_vm15, %v1238_v52, %v1233_v50  ;;  %vm1124_vm7 = vmpackc.low %vm2061_vm12, %vm2061_vm12 }
 0x559   :  { %v1261_v62 = vpop.permute.xlu0 %1260  ;;  %v1246_v2 = vpop.permute.xlu1 %1245  ;;  %v1120_v10 = vpack.c.bf16 %v581_v58, %v580_v57  ;;  %v1123_v12 = vpack.c.bf16 %v583_v60, %v582_v59  ;;  %vm1127_vm13 = vmpackc.low %vm2062_vm3, %vm2062_vm3  ;;  %vm2063_vm6 = vcmp.lt.s32.totalorder %v1403_v8, 16 }
 0x55a   :  { %v1248_v15 = vunpack.i.h.bf16 %v1246_v2  ;;  %v1247_v19 = vunpack.i.l.bf16 %v1246_v2  ;;  %vm2064_vm15 = vmmov %vm2063_vm6  ;;  %v1263_v43 = vunpack.i.h.bf16 %v1261_v62  ;;  %v1262_v4 = vunpack.i.l.bf16 %v1261_v62 }
 0x55b   :  { %1122 = vmatprep.subr.msk.bf16.mxu1 %vm1121_vm5, %v1120_v10  ;;  %vm2065_vm0 = vmmov %vm2063_vm6  ;;  %vm2067_vm5 = vnez %v1976_v23 }
 0x55c   :  { %v597_v1 = vsel %vm2063_vm6, %v1243_v13, %v1248_v15  ;;  %v599_v17 = vsel %vm2064_vm15, %v1248_v15, %v1243_v13  ;;  %v596_v22 = vsel %vm2065_vm0, %v1242_v14, %v1247_v19  ;;  %vm2066_vm12 = vmmov %vm2065_vm0  ;;  %1125 = vmatpush1.bf16.msk.msra.mxu1 %vm1124_vm7, %v1123_v12  ;;  %vm2068_vm6 = vcmp.lt.s32.totalorder %v1403_v8, 15 }
 0x55d   :  { %v598_v7 = vsel %vm2066_vm12, %v1247_v19, %v1242_v14  ;;  %v1126_v27 = vpack.c.bf16 %v597_v1, %v596_v22  ;;  %v1271_v28 = vpop.permute.xlu0 %1270  ;;  %v1256_v33 = vpop.permute.xlu1 %1255  ;;  %vm1130_vm3 = vmpackc.low %vm2067_vm5, %vm2067_vm5  ;;  %vm2072_vm12 = vnez %v1978_v24 }
 0x55e   :  { %v1129_v16 = vpack.c.bf16 %v599_v17, %v598_v7  ;;  %v1258_v34 = vunpack.i.h.bf16 %v1256_v33  ;;  %v1257_v37 = vunpack.i.l.bf16 %v1256_v33  ;;  %vm2069_vm0 = vmmov %vm2068_vm6  ;;  %v1273_v51 = vunpack.i.h.bf16 %v1271_v28 }
 0x55f   :  { %1128 = vmatprep.subr.msk.bf16.mxu1 %vm1127_vm13, %v1126_v27  ;;  %vm2070_vm7 = vmmov %vm2069_vm0  ;;  %vm2073_vm13 = vnez %v1983_v26  ;;  %v1272_v52 = vunpack.i.l.bf16 %v1271_v28 }
 0x560   :  { %v613_v5 = vsel %vm2068_vm6, %v1253_v21, %v1258_v34  ;;  %v615_v38 = vsel %vm2069_vm0, %v1258_v34, %v1253_v21  ;;  %v612_v40 = vsel %vm2070_vm7, %v1252_v0, %v1257_v37  ;;  %vm2071_vm15 = vmmov %vm2069_vm0  ;;  %1131 = vmatpush1.bf16.msk.msra.mxu1 %vm1130_vm3, %v1129_v16  ;;  %vm2074_vm0 = vcmp.lt.s32.totalorder %v1403_v8, 1 }
 0x561   :  { %v614_v6 = vsel %vm2071_vm15, %v1257_v37, %v1252_v0  ;;  %vm1133_vm5 = vmpackc.low %vm2072_vm12, %vm2072_vm12  ;;  %v1132_v23 = vpack.c.bf16 %v613_v5, %v612_v40  ;;  %v1266_v42 = vpop.permute.xlu1 %1265  ;;  %v1281_v20 = vpop.permute.xlu0 %1280  ;;  %vm2078_vm12 = vnez %v1980_v25 }
 0x562   :  { %v1135_v41 = vpack.c.bf16 %v615_v38, %v614_v6  ;;  %vm1136_vm6 = vmpackc.low %vm2073_vm13, %vm2073_vm13  ;;  %v1268_v45 = vunpack.i.h.bf16 %v1266_v42  ;;  %v1267_v47 = vunpack.i.l.bf16 %v1266_v42  ;;  %v1283_v60 = vunpack.i.h.bf16 %v1281_v20 }
 0x563   :  { %1134 = vmatprep.subr.msk.bf16.mxu1 %vm1133_vm5, %v1132_v23  ;;  %vm2075_vm3 = vmmov %vm2074_vm0  ;;  %vm2079_vm5 = vnez %v1988_v29  ;;  %v1282_v31 = vunpack.i.l.bf16 %v1281_v20 }
 0x564   :  { %v629_v44 = vsel %vm2074_vm0, %v1263_v43, %v1268_v45  ;;  %v631_v24 = vsel %vm2075_vm3, %v1268_v45, %v1263_v43  ;;  %vm2076_vm7 = vmmov %vm2074_vm0  ;;  %1137 = vmatpush1.bf16.msk.msra.mxu1 %vm1136_vm6, %v1135_v41  ;;  %vm2080_vm6 = vcmp.lt.s32.totalorder %v1403_v8, 127 }
 0x565   :  { %v628_v46 = vsel %vm2076_vm7, %v1262_v4, %v1267_v47  ;;  %vm2077_vm15 = vmmov %vm2074_vm0  ;;  %v1276_v50 = vpop.permute.xlu1 %1275  ;;  %v1291_v58 = vpop.permute.xlu0 %1290 }
 0x566   :  { %v630_v26 = vsel %vm2077_vm15, %v1267_v47, %v1262_v4  ;;  %vm1139_vm13 = vmpackc.low %vm2078_vm12, %vm2078_vm12  ;;  %v1138_v48 = vpack.c.bf16 %v629_v44, %v628_v46  ;;  %v1278_v54 = vunpack.i.h.bf16 %v1276_v50  ;;  %v1277_v57 = vunpack.i.l.bf16 %v1276_v50 }
 0x567   :  { %v1141_v49 = vpack.c.bf16 %v631_v24, %v630_v26  ;;  %vm1142_vm0 = vmpackc.low %vm2079_vm5, %vm2079_vm5  ;;  %vm2084_vm5 = vcmp.lt.s32.totalorder %v1403_v8, 113  ;;  %v1293_v14 = vunpack.i.h.bf16 %v1291_v58  ;;  %v1292_v36 = vunpack.i.l.bf16 %v1291_v58 }
 0x568   :  { %vm1145_vm3 = vmpackc.low %vm2040_vm4, %vm2040_vm4  ;;  %1140 = vmatprep.subr.msk.bf16.mxu1 %vm1139_vm13, %v1138_v48  ;;  %v651_v25 = vsel %vm2080_vm6, %v1278_v54, %v1273_v51  ;;  %v785_v26 = vand.u32 3, %v1403_v8 }
 0x569   :  { %vm2081_vm7 = vmmov %vm2080_vm6  ;;  %1143 = vmatpush1.bf16.msk.msra.mxu1 %vm1142_vm0, %v1141_v49  ;;  %v1286_v29 = vpop.permute.xlu1 %1285  ;;  %v1301_v1 = vpop.permute.xlu0 %1300 }
 0x56a   :  { %v650_v59 = vsel %vm2081_vm7, %v1277_v57, %v1272_v52  ;;  %1146 = vmatprep.subr.msk.bf16.mxu1 %vm1145_vm3, %v1760_v53  ;;  %vm1148_vm15 = vmpackc.low %vm1559_vm1, %vm1559_vm1  ;;  %v1288_v62 = vunpack.i.h.bf16 %v1286_v29  ;;  %v1287_v2 = vunpack.i.l.bf16 %v1286_v29  ;;  %v1303_v28 = vunpack.i.h.bf16 %v1301_v1 }
 0x56b   :  { %vm1151_vm4 = vmpackc.low %vm2039_vm2, %vm2039_vm2  ;;  %v1150_v13 = vpack.c.bf16 %v651_v25, %v650_v59  ;;  %vm2086_vm2 = vnez %v2013_v61  ;;  %v1302_v9 = vunpack.i.l.bf16 %v1301_v1 }
 0x56c   :  { %vm2082_vm12 = vmmov %vm2080_vm6  ;;  %v667_v56 = vsel %vm2084_vm5, %v1288_v62, %v1283_v60 }
 0x56d   :  { %v649_v10 = vsel %vm2082_vm12, %v1273_v51, %v1278_v54  ;;  %vm2083_vm13 = vmmov %vm2080_vm6  ;;  %1149 = vmatpush1.bf16.msk.msra.mxu1 %vm1148_vm15, %v1762_v55  ;;  %v1296_v15 = vpop.permute.xlu1 %1295  ;;  %vm2089_vm15 = vcmp.lt.s32.totalorder %v1403_v8, 112 }
 0x56e   :  { %v648_v12 = vsel %vm2083_vm13, %v1272_v52, %v1277_v57  ;;  %vm2085_vm1 = vmmov %vm2084_vm5  ;;  %1152 = vmatprep.subr.msk.bf16.mxu1 %vm1151_vm4, %v1150_v13  ;;  %v1298_v17 = vunpack.i.h.bf16 %v1296_v15  ;;  %v1297_v22 = vunpack.i.l.bf16 %v1296_v15 }
 0x56f   :  { %v666_v53 = vsel %vm2085_vm1, %v1287_v2, %v1282_v31  ;;  %vm1154_vm0 = vmpackc.low %vm2086_vm2, %vm2086_vm2  ;;  %v1153_v19 = vpack.c.bf16 %v649_v10, %v648_v12  ;;  %vm2095_vm2 = vnez %v2044_v35 }
 0x570   :  { %vm1157_vm3 = vmpackc.low %vm1586_vm8, %vm1586_vm8  ;;  %v1156_v27 = vpack.c.bf16 %v667_v56, %v666_v53  ;;  %v683_v61 = vsel %vm2089_vm15, %v1298_v17, %v1293_v14 }
 0x571   :  { %vm2087_vm6 = vmmov %vm2085_vm1  ;;  %1155 = vmatpush1.bf16.msk.msra.mxu1 %vm1154_vm0, %v1153_v19  ;;  %v1306_v33 = vpop.permute.xlu1 %1305  ;;  %v1318_v19 = vld [vmem:[%s1934_s0] sm:$0xff] }
 0x572   :  { %v665_v7 = vsel %vm2087_vm6, %v1283_v60, %v1288_v62  ;;  %vm2088_vm7 = vmmov %vm2085_vm1  ;;  %1158 = vmatprep.subr.msk.bf16.mxu1 %vm1157_vm3, %v1156_v27  ;;  %v1308_v0 = vunpack.i.h.bf16 %v1306_v33  ;;  %v1307_v34 = vunpack.i.l.bf16 %v1306_v33  ;;  %vm2093_vm1 = vcmp.lt.s32.totalorder %v1403_v8, 111 }
 0x573   :  { %v664_v55 = vsel %vm2088_vm7, %v1282_v31, %v1287_v2  ;;  %vm2090_vm4 = vmmov %vm2089_vm15  ;;  %vm797_vm15 = vcmask 64512  }
 0x574   :  { %v682_v16 = vsel %vm2090_vm4, %v1297_v22, %v1292_v36  ;;  %vm1160_vm8 = vmpackc.low %vm1639_vm9, %vm1639_vm9  ;;  %v1159_v21 = vpack.c.bf16 %v665_v7, %v664_v55  ;;  %v699_v32 = vsel %vm2093_vm1, %v1308_v0, %v1303_v28 }
 0x575   :  { %vm1163_vm12 = vmpackc.low %vm1601_vm10, %vm1601_vm10  ;;  %v1162_v38 = vpack.c.bf16 %v683_v61, %v682_v16 }
 0x576   :  { %vm2091_vm13 = vmmov %vm2090_vm4  ;;  %1161 = vmatpush1.bf16.msk.msra.mxu1 %vm1160_vm8, %v1159_v21 }
 0x577   :  { %v681_v37 = vsel %vm2091_vm13, %v1293_v14, %v1298_v17  ;;  %vm2092_vm5 = vmmov %vm2090_vm4  ;;  %1164 = vmatprep.subr.msk.bf16.mxu1 %vm1163_vm12, %v1162_v38  ;;  %v1319_v17 = vld [vmem:[%s1934_s0 + $0x8] sm:$0xff] }
 0x578   :  { %v680_v5 = vsel %vm2092_vm5, %v1292_v36, %v1297_v22  ;;  %vm2094_vm9 = vmmov %vm2093_vm1 }
 0x579   :  { %v698_v40 = vsel %vm2094_vm9, %v1307_v34, %v1302_v9  ;;  %vm1166_vm0 = vmpackc.low %vm2095_vm2, %vm2095_vm2  ;;  %v1165_v11 = vpack.c.bf16 %v681_v37, %v680_v5 }
 0x57a   :  { %vm1169_vm10 = vmpackc.low %vm1681_vm14, %vm1681_vm14  ;;  %v1168_v41 = vpack.c.bf16 %v699_v32, %v698_v40  ;;  %v708_v42 = vpop.permute.xlu0 %707  ;;  %vm1333_vm14 = vmmov 0  }
 0x57b   :  { %vm2096_vm3 = vmmov %vm2093_vm1  ;;  %1167 = vmatpush1.bf16.msk.msra.mxu1 %vm1166_vm0, %v1165_v11  ;;  %1080 = vmatprep.mubr.msk.f32.mxu0 %vm1333_vm14, %v1328_v3 }
 0x57c   :  { %v697_v6 = vsel %vm2096_vm3, %v1303_v28, %v1308_v0  ;;  %vm2097_vm6 = vmmov %vm2093_vm1  ;;  %1170 = vmatprep.subr.msk.bf16.mxu1 %vm1169_vm10, %v1168_v41 }
 0x57d   :  { %v696_v23 = vsel %vm2097_vm6, %v1302_v9, %v1307_v34  ;;  %vm1172_vm7 = vmpackc.low %vm1697_vm11, %vm1697_vm11  ;;  %vm786_vm11 = vcmp.eq.s32.totalorder %v784_v30, %v785_v26 }
 0x57e   :  { %v1171_v35 = vpack.c.bf16 %v697_v6, %v696_v23  ;;  %v1049_v48 = vsel %vm786_vm11, 1.0, %v1328_v3 }
 0x580   :  { %1173 = vmatpush1.bf16.msk.msra.mxu1 %vm1172_vm7, %v1171_v35 }
 0x583   :  { %778 = vmatmul.mubr.f32.vlgmr.msra.gmra.mrb[0].mxu1 %v570_v18 }
 0x656   :  { %v779_v43 = vpop.f32.mrb[0].mxu1 }
 0x657   :  { %v780_v4 = vadd.f32 %v779_v43, %v708_v42  ;;  %v781_v20 = vpop.f32.mrb[1].mxu1 }
 0x658   :  { %v782_v45 = vadd.f32 %v781_v20, %v708_v42 }
 0x659   :  { %v792_v47 = vmul.f32 %v780_v4, %v780_v4 }
 0x65a   :  { %v789_v44 = vadd.f32 %v782_v45, %v780_v4  ;;  %v793_v24 = vmul.f32 %v782_v45, %v782_v45 }
 0x65c   :  { %790 = vadd.xlane.f32.xlu1 %v789_v44  ;;  %v794_v46 = vadd.f32 %v793_v24, %v792_v47 }
 0x65e   :  { %795 = vadd.xlane.f32.xlu0 %v794_v46 }
 0x6e9   :  { %v791_v49 = vpop.xlane.xlu1 %790 }
 0x6ea   :  { %1079 = vmatpush3.msra.mxu0 %v791_v49 }
 0x6eb   :  { %1081 = vmatmul.mubr.msk.f32.vlgmr.msra.gmra.mrb[8].mxu0 %vm797_vm15, %v1049_v48  ;;  %v796_v50 = vpop.xlane.xlu0 %795  ;;  %1083 = vmatprep.subr.mxu0 %v1328_v3 }
 0x6ec   :  { %1084 = vmatpush3.msra.mxu0 %v796_v50  ;;  %1085 = vmatprep.mubr.msk.f32.mxu0 %vm1333_vm14, %v1328_v3 }
 0x6ef   :  { %1086 = vmatmul.mubr.msk.f32.vlgmr.msra.gmra.mrb[10].mxu0 %vm797_vm15, %v1049_v48 }
 0x7be   :  { %v867_v51 = vpop.f32.mrb[8].mxu0 }
 0x7bf   :  { %v871_v52 = vmul.f32 0.001953125, %v867_v51  ;;  %v1082_v54 = vpop.f32.mrb[9].mxu0 }
 0x7c1   :  { %v943_v57 = vmul.f32 %v871_v52, %v871_v52 }
 0x7c2   :  { %v938_v63 = vpop.f32.mrb[10].mxu0 }
 0x7c3   :  { %v942_v8 = vmul.f32 0.001953125, %v938_v63  ;;  %v1087_v58 = vpop.f32.mrb[11].mxu0 }
 0x7c5   :  { %v944_v25 = vsub.f32 %v942_v8, %v943_v57 }
 0x7c7   :  { %v945_v59 = vmax.f32 %v944_v25, 0.0 }
 0x7c9   :  { %v946_v29 = vadd.f32 1e-05, %v945_v59 }
 0x7cb   :  { %1316 = vrsqrt.f32 %v946_v29 }
 0x7d5   :  { %v1317_v60 = vpop.eup %1316 }
 0x7d6   :  { %949 = vrot.lane.b32.xlu1 %v1317_v60, %s1322_s24 }
 0x848   :  { %v950_v31 = vpop.permute.xlu1 %949 }
 0x849   :  { %v952_v62 = vmul.f32 %v950_v31, %v1785_v39 }
 0x84b   :  { %960 = vrot.lane.b32.xlu0 %v952_v62, %s1324_s26 }
 0x8bd   :  { %v961_v3 = vpop.permute.xlu0 %960 }
 0x8be   :  { %v963_v2 = vmul.f32 %v961_v3, %v871_v52 }
 0x8c0   :  { %965 = vrot.lane.b32.xlu1 %v963_v2, %s1331_s1 }
 0x8c4   :  { %955 = vperm.xlu1 %1310, %v952_v62  }
 0x932   :  { %v966_v10 = vpop.permute.xlu1 %965 }
 0x933   :  { %v968_v12 = vsub.f32 %v1785_v39, %v966_v10 }
 0x935   :  { %971 = vperm.xlu0 %1311, %v968_v12  }
 0x943   :  { %v956_v13 = vpop.permute.xlu1 %955 }
 0x944   :  { %v958_v56 = vmul.f32 %v956_v13, %v780_v4  ;;  %v959_v53 = vmul.f32 %v956_v13, %v782_v45 }
 0x9b4   :  { %v972_v14 = vpop.permute.xlu0 %971 }
 0x9b5   :  { %v974_v15 = vadd.f32 %v972_v14, %v958_v56  ;;  %v975_v36 = vadd.f32 %v972_v14, %v959_v53 }
 0x9b7   :  { %v976_v1 = vadd.f32 %v1318_v19, %v974_v15  ;;  %v977_v22 = vadd.f32 %v1319_v17, %v975_v36 }
 0x9b9   :  { %v978_v7 = vmax.f32 %v976_v1, 0.0  ;;  %v979_v55 = vmax.f32 %v977_v22, 0.0 }
 0x9bb   :  { %980 = vst [vmem:[%s1939_s5] sm:$0xff] %v978_v7  ;;  %981 = vst [vmem:[%s1939_s5 + $0x8] sm:$0xff] %v979_v55 }

</bundles_post_ra>
